<compile_context>
chip_gen: v6e
topology: v6e:2x2x1
jax: 0.10.0
libtpu: 0.0.40
codegen_flags: <defaults>
</compile_context>

<pallas_src>
import functools

import jax
import jax.numpy as jnp
from jax.experimental import pallas as pl
from jax.experimental.pallas import tpu as pltpu


# ---------------------------------------------------------------------------
# Fused kernel: LayerNorm (row tile) -> Linear (MXU) -> residual add -> store
# ---------------------------------------------------------------------------
def _fused_sublayer_kernel(x_ref, gamma_ref, beta_ref, w_ref, bias_ref, o_ref,
                           *, eps, features):
    # Single load of the row tile; all LN statistics kept in f32 on the VPU/XLU.
    x = x_ref[...].astype(jnp.float32)                                  # (TM, H)
    mean = jnp.mean(x, axis=-1, keepdims=True)                          # (TM, 1)
    centered = x - mean
    # torch.Tensor.std default is unbiased (ddof=1); eps is added to std, not var.
    var = jnp.sum(centered * centered, axis=-1, keepdims=True) * (1.0 / (features - 1))
    # Per-row reciprocal on (TM,1), then a broadcast multiply over (TM,H):
    # much cheaper than a (TM,H) divide. Exact reciprocal (only TM values).
    inv = pl.reciprocal(jnp.sqrt(var) + eps)                            # (TM, 1)

    gamma = gamma_ref[...].astype(jnp.float32)                          # (1, H), resident
    beta = beta_ref[...].astype(jnp.float32)                            # (1, H), resident
    ln = gamma * (centered * inv) + beta                                # (TM, H)

    # Dense sublayer on the MXU. f32 operands + HIGHEST precision to match the f32
    # PyTorch math; for bf16 activations one would feed bf16 operands (2x MXU rate,
    # half the HBM traffic) and keep only the accumulator in f32.
    acc = jnp.dot(ln, w_ref[...].astype(jnp.float32),
                  preferred_element_type=jnp.float32,
                  precision=jax.lax.Precision.HIGHEST)                  # (TM, H)
    acc = acc + bias_ref[...].astype(jnp.float32)

    # Residual add (dropout = identity in eval); single lane-dense store.
    o_ref[...] = (x + acc).astype(o_ref.dtype)


# ---------------------------------------------------------------------------
# Wrapper: row-tiled, pipelined, megacore-parallel
# ---------------------------------------------------------------------------
def sublayer_connection(x, a_2, b_2, w, b, *, eps=1e-6, block_rows=256):
    """x: (B, S, H); sublayer = Linear(w: (H, H), b: (H,)). Returns (B, S, H).

    Computes x + dropout(Linear(LayerNorm(x))) (eval-mode dropout), fully fused.
    """
    B, S, H = x.shape
    assert w.shape == (H, H) and b.shape == (H,)
    rows = B * S
    x2d = x.reshape(rows, H)

    # Row tile: multiple of 8 sublanes (f32), capped by block_rows; pad ragged tail.
    # TODO(synk): for very large H (e.g. 4096+ on v7x's 64 MiB VMEM) the weight would
    # additionally be tiled over K/N with a VMEM f32 accumulator; not needed at H=128.
    tm = min(block_rows, ((rows + 7) // 8) * 8)
    tm = max(8, ((tm + 7) // 8) * 8)
    rows_p = pl.cdiv(rows, tm) * tm
    if rows_p != rows:
        x2d = jnp.pad(x2d, ((0, rows_p - rows), (0, 0)))

    kernel = functools.partial(_fused_sublayer_kernel, eps=eps, features=H)

    out = pl.pallas_call(
        kernel,
        out_shape=jax.ShapeDtypeStruct((rows_p, H), x.dtype),
        grid_spec=pltpu.PrefetchScalarGridSpec(
            num_scalar_prefetch=0,
            grid=(rows_p // tm,),
            in_specs=[
                pl.BlockSpec((tm, H), lambda i: (i, 0)),   # x row tile (pipelined)
                pl.BlockSpec((1, H), lambda i: (0, 0)),    # gamma  (VMEM-resident)
                pl.BlockSpec((1, H), lambda i: (0, 0)),    # beta   (VMEM-resident)
                pl.BlockSpec((H, H), lambda i: (0, 0)),    # weight (VMEM-resident)
                pl.BlockSpec((1, H), lambda i: (0, 0)),    # bias   (VMEM-resident)
            ],
            out_specs=pl.BlockSpec((tm, H), lambda i: (i, 0)),
        ),
        compiler_params=pltpu.CompilerParams(
            # Row tiles are independent -> shard across TensorCores on megacore chips.
            dimension_semantics=("parallel",),
        ),
    )(x2d, a_2.reshape(1, H), b_2.reshape(1, H), w, b.reshape(1, H))

    if rows_p != rows:
        out = out[:rows]
    return out.reshape(B, S, H)


# ---------------------------------------------------------------------------
# Pure-JAX reference (PyTorch-equivalent math) for verification
# ---------------------------------------------------------------------------
def reference(x, a_2, b_2, w, b, eps=1e-6):
    mean = jnp.mean(x, axis=-1, keepdims=True)
    var = jnp.sum((x - mean) ** 2, axis=-1, keepdims=True) / (x.shape[-1] - 1)
    std = jnp.sqrt(var)
    normed = a_2 * (x - mean) / (std + eps) + b_2
    sub = jnp.dot(normed, w, precision=jax.lax.Precision.HIGHEST) + b
    return x + sub


if __name__ == "__main__":
    # H=128 keeps the feature axis lane-dense (full 128-lane vregs, unmasked stores);
    # rows = B*S = 256 with block_rows=128 gives a 2-step pipelined / 2-core grid.
    B, S, H = 2, 128, 128
    key = jax.random.PRNGKey(0)
    kx, kw, kb = jax.random.split(key, 3)

    x = jax.random.normal(kx, (B, S, H), dtype=jnp.float32)

    # LayerNorm parameters (nn.Parameter defaults: ones / zeros)
    a_2 = jnp.ones((H,), dtype=jnp.float32)
    b_2 = jnp.zeros((H,), dtype=jnp.float32)

    # Example sublayer: dense layer with deterministic random weights
    w = jax.random.normal(kw, (H, H), dtype=jnp.float32) * 0.1
    b = jax.random.normal(kb, (H,), dtype=jnp.float32) * 0.1

    out = sublayer_connection(x, a_2, b_2, w, b, block_rows=128)
    out = jax.block_until_ready(out)

    ref = reference(x, a_2, b_2, w, b)
    assert out.shape == (B, S, H)
    assert jnp.allclose(out, ref, atol=1e-3, rtol=1e-3), "mismatch vs reference"

    print("KERNEL_OK")
</pallas_src>

<mosaic_0001>
module attributes {stable_mosaic.version = 11 : i64} {
  func.func @_fused_sublayer_kernel(%arg0: i32, %arg1: memref<128x128xf32, #tpu.memory_space<vmem>>, %arg2: memref<1x128xf32, #tpu.memory_space<vmem>>, %arg3: memref<1x128xf32, #tpu.memory_space<vmem>>, %arg4: memref<128x128xf32, #tpu.memory_space<vmem>>, %arg5: memref<1x128xf32, #tpu.memory_space<vmem>>, %arg6: memref<128x128xf32, #tpu.memory_space<vmem>>) attributes {dimension_semantics = [#tpu.dimension_semantics<parallel>], iteration_bounds = array<i64: 2>, scalar_prefetch = 0 : i64, scratch_operands = 0 : i64, tpu.core_type = #tpu.core_type<tc>, window_params = [{transform_indices = @transform_0, window_bounds = array<i64: 128, 128>}, {pipeline_mode = #tpu.pipeline_mode<synchronous>, transform_indices = @transform_1, window_bounds = array<i64: 1, 128>}, {pipeline_mode = #tpu.pipeline_mode<synchronous>, transform_indices = @transform_2, window_bounds = array<i64: 1, 128>}, {pipeline_mode = #tpu.pipeline_mode<synchronous>, transform_indices = @transform_3, window_bounds = array<i64: 128, 128>}, {pipeline_mode = #tpu.pipeline_mode<synchronous>, transform_indices = @transform_4, window_bounds = array<i64: 1, 128>}, {transform_indices = @transform_5, window_bounds = array<i64: 128, 128>}]} {
    %c0 = arith.constant 0 : index
    %c0_0 = arith.constant 0 : index
    %0 = vector.load %arg1[%c0, %c0_0] : memref<128x128xf32, #tpu.memory_space<vmem>>, vector<128x128xf32>
    %cst = arith.constant dense<0.000000e+00> : vector<128xf32>
    %1 = vector.multi_reduction <add>, %0, %cst [1] : vector<128x128xf32> to vector<128xf32>
    %2 = vector.shape_cast %1 : vector<128xf32> to vector<128x1xf32>
    %cst_1 = arith.constant 1.280000e+02 : f32
    %3 = vector.broadcast %cst_1 : f32 to vector<128x1xf32>
    %4 = arith.divf %2, %3 : vector<128x1xf32>
    %5 = vector.broadcast %4 : vector<128x1xf32> to vector<128x128xf32>
    %6 = arith.subf %0, %5 : vector<128x128xf32>
    %7 = arith.mulf %6, %6 : vector<128x128xf32>
    %cst_2 = arith.constant dense<0.000000e+00> : vector<128xf32>
    %8 = vector.multi_reduction <add>, %7, %cst_2 [1] : vector<128x128xf32> to vector<128xf32>
    %9 = vector.shape_cast %8 : vector<128xf32> to vector<128x1xf32>
    %cst_3 = arith.constant 0.00787401571 : f32
    %10 = vector.broadcast %cst_3 : f32 to vector<128x1xf32>
    %11 = arith.mulf %9, %10 : vector<128x1xf32>
    %12 = math.sqrt %11 : vector<128x1xf32>
    %cst_4 = arith.constant 9.99999997E-7 : f32
    %13 = vector.broadcast %cst_4 : f32 to vector<128x1xf32>
    %14 = arith.addf %12, %13 : vector<128x1xf32>
    %15 = tpu.reciprocal %14 : vector<128x1xf32> -> vector<128x1xf32>
    %c0_5 = arith.constant 0 : index
    %c0_6 = arith.constant 0 : index
    %16 = vector.load %arg2[%c0_5, %c0_6] : memref<1x128xf32, #tpu.memory_space<vmem>>, vector<1x128xf32>
    %c0_7 = arith.constant 0 : index
    %c0_8 = arith.constant 0 : index
    %17 = vector.load %arg3[%c0_7, %c0_8] : memref<1x128xf32, #tpu.memory_space<vmem>>, vector<1x128xf32>
    %18 = vector.broadcast %15 : vector<128x1xf32> to vector<128x128xf32>
    %19 = arith.mulf %6, %18 : vector<128x128xf32>
    %20 = vector.broadcast %16 : vector<1x128xf32> to vector<128x128xf32>
    %21 = arith.mulf %20, %19 : vector<128x128xf32>
    %22 = vector.broadcast %17 : vector<1x128xf32> to vector<128x128xf32>
    %23 = arith.addf %21, %22 : vector<128x128xf32>
    %c0_9 = arith.constant 0 : index
    %c0_10 = arith.constant 0 : index
    %24 = vector.load %arg4[%c0_9, %c0_10] : memref<128x128xf32, #tpu.memory_space<vmem>>, vector<128x128xf32>
    %cst_11 = arith.constant dense<0.000000e+00> : vector<128x128xf32>
    %25 = tpu.matmul %23, %24, %cst_11 {dimension_numbers = #tpu.dot_dimension_numbers<[1], [0], [0], [1], [0, 0, 1, 1], [], []>, precision = #tpu.contract_precision<fp32>} : vector<128x128xf32>, vector<128x128xf32>, vector<128x128xf32> -> vector<128x128xf32>
    %c0_12 = arith.constant 0 : index
    %c0_13 = arith.constant 0 : index
    %26 = vector.load %arg5[%c0_12, %c0_13] : memref<1x128xf32, #tpu.memory_space<vmem>>, vector<1x128xf32>
    %27 = vector.broadcast %26 : vector<1x128xf32> to vector<128x128xf32>
    %28 = arith.addf %25, %27 : vector<128x128xf32>
    %29 = arith.addf %0, %28 : vector<128x128xf32>
    %c0_14 = arith.constant 0 : index
    %c0_15 = arith.constant 0 : index
    %30 = vector.load %arg6[%c0_14, %c0_15] : memref<128x128xf32, #tpu.memory_space<vmem>>, vector<128x128xf32>
    tpu.vector_store %arg6[%c0_14, %c0_15], %29 {strides = array<i32>} : memref<128x128xf32, #tpu.memory_space<vmem>>, vector<128x128xf32>,
    return
  }
  func.func @transform_0(%arg0: i32) -> (i32, i32) {
    %c0_i32 = arith.constant 0 : i32
    %c0_i32_0 = arith.constant 0 : i32
    return %arg0, %c0_i32 : i32, i32
  }
  func.func @transform_1(%arg0: i32) -> (i32, i32) {
    %c0_i32 = arith.constant 0 : i32
    %c0_i32_0 = arith.constant 0 : i32
    %c0_i32_1 = arith.constant 0 : i32
    return %c0_i32, %c0_i32_0 : i32, i32
  }
  func.func @transform_2(%arg0: i32) -> (i32, i32) {
    %c0_i32 = arith.constant 0 : i32
    %c0_i32_0 = arith.constant 0 : i32
    %c0_i32_1 = arith.constant 0 : i32
    return %c0_i32, %c0_i32_0 : i32, i32
  }
  func.func @transform_3(%arg0: i32) -> (i32, i32) {
    %c0_i32 = arith.constant 0 : i32
    %c0_i32_0 = arith.constant 0 : i32
    %c0_i32_1 = arith.constant 0 : i32
    return %c0_i32, %c0_i32_0 : i32, i32
  }
  func.func @transform_4(%arg0: i32) -> (i32, i32) {
    %c0_i32 = arith.constant 0 : i32
    %c0_i32_0 = arith.constant 0 : i32
    %c0_i32_1 = arith.constant 0 : i32
    return %c0_i32, %c0_i32_0 : i32, i32
  }
  func.func @transform_5(%arg0: i32) -> (i32, i32) {
    %c0_i32 = arith.constant 0 : i32
    %c0_i32_0 = arith.constant 0 : i32
    return %arg0, %c0_i32 : i32, i32
  }
}

</mosaic_0001>

<bundles_post_ra>
// kernel: tpu_custom_call.1
= control target key start
LH: loop header
LB: loop body
LE: loop exit
PB: predicated region body
PF: predicated region fallthrough
CT: control target
= control target key end

     0   :  { %10 = vsyncpa [#allocation3], 0  ;;  %s4174_s0 = inlined_call_operand.hbm [shape: f32[256,128], index: 0, kind: input, shape index: {}]   ;;  %s4175_s1 = inlined_call_operand.vmem [shape: f32[1,128], index: 1, kind: input, shape index: {}]   ;;  %s4176_s2 = inlined_call_operand.vmem [shape: f32[1,128], index: 2, kind: input, shape index: {}]   ;;  %s4177_s3 = inlined_call_operand.hbm [shape: f32[128,128], index: 3, kind: input, shape index: {}]   ;;  %s4178_s4 = inlined_call_operand.vmem [shape: f32[1,128], index: 4, kind: input, shape index: {}]   ;;  %s4179_s5 = inlined_call_operand.hbm [shape: f32[256,128], index: 5, kind: output, shape index: {}]  }
   0x1   :  { %12 = vsyncpa [#allocation3 + $0x1], 0 }
   0x2   :  { %13 = vsyncpa [#allocation6], 0 }
   0x3   :  { %14 = vsyncpa [#allocation4], 0 }
   0x4   :  { %16 = vsyncpa [#allocation4 + $0x1], 0  ;;  %s2900_s18 = smov 0   ;;  %s2902_s19 = smov 0  }
   0x5   :  { %s2904_s20 = smov 0   ;;  %s2906_s21 = smov 0  }
   0x6 LB: > { %s2921_s22 = sadd.s32 4294967295, %s2861_s21   ;;  %s2049_s23 = sadd.s32 4294967294, %s2861_s21   ;;  %s2861_s21 = sphi %s2906_s21, %s4347_s21   ;;  %s2857_s20 = sphi %s2904_s20, %s4346_s20   ;;  %s2853_s19 = sphi %s2902_s19, %s4345_s19   ;;  %s2849_s18 = sphi %s2900_s18, %s4344_s18  }
   0x7   : > { %p42_p0 = scmp.ne.s32.totalorder %s2853_s19, %s2849_s18  ;;  %p4180_p1 = scmp.eq.s32.totalorder %s2921_s22, 0 }
   0x8   : > { %p156_p3 = scmp.eq.s32.totalorder %s2049_s23, 1  ;;  %p2050_p5 = scmp.ge.s32.totalorder %s2861_s21, 1 }
   0x9   : > { %p2930_p4 = por %p4180_p1, %p42_p0  ;;  %p163_p7 = scmp.lt.s32.totalorder %s2861_s21, 3 }
   0xa   : > { %p2935_p6 = por %p156_p3, %p42_p0  ;;  %s2863_s27 = smov [#allocation5]  }
   0xb   : > { %s4245_s24 = scalar_select %p2930_p4, 1, 0 }
   0xc   : > { %s4246_s25 = scalar_select %p2935_p6, 1, 0 }
   0xd   : > { %p2940_p8 = pnand %p2050_p5, %p163_p7  ;;  %s181_s28 = sshll.u32 %s2863_s27, 4  ;;  %s182_s28 = int_to_ptr.vmem [resolvable:$true] %s181_s28 }
   0xe   : > { %s2954_s30 = sadd.s32 1, %s2861_s21   ;;  %s29_s6 = sadd.s32 1, %s2857_s20 }
   0xf   : > { %s4247_s26 = scalar_select %p2940_p8, 1, 0 }
  0x10   : > { %p2606_p9 = pneg %p2940_p8  ;;  %s26_s7 = ssub.s32 %s2861_s21, %s2954_s30 }
  0x11   : > { %s2750_s8 = scalar_lea.vmem %s182_s28, 2048  ;;  %p2758_p5 = scmp.lt.s32.totalorder %s182_s28, %s182_s28 }
  0x12   : > { %p2949_p11 = pnand %p2606_p9, %p4180_p1  ;;  %p2751_p13 = scmp.ne.s32.totalorder %s182_s28, %s2750_s8 }
  0x13   : > { %p2759_p7 = scmp.lt.s32.totalorder %s2750_s8, %s2750_s8 }
  0x14   : > { %p2741_p12 = pneg %p2949_p11 }
  0x15   : > { %p2760_p10 = por %p2759_p7, %p2758_p5 }
  0x16   : > { %p2753_p0 = pnand %p2751_p13, %p2741_p12 }
  0x18   : > { %p2754_p3 = pneg %p2753_p0 }
  0x1a   : > { %p2761_p2 = pnand %p2760_p10, %p2754_p3 }
  0x1c   : > { %2764 = shalt.err (!%p2761_p2)
}
  0x1d   : > { %s4181_s9 = smov 128   ;;  %s2865_s10 = smov 8  }
  0x1e   : > { %2609 = dma.hbm_to_vmem [thread:$0]  (!%p2949_p11), %s4177_s3, 2048, %s182_s28, [#allocation6], %s4181_s9, %s4181_s9, %s2865_s10  }
  0x1f   : > { %p27_p2 = scmp.eq.s32.totalorder %s26_s7, 0  ;;  %p36_p9 = scmp.ne.s32.totalorder %s2857_s20, %s2853_s19 }
  0x20   : > { %p37_p10 = scmp.eq.s32.totalorder %s2861_s21, 0  ;;  %p2619_p12 = scmp.lt.s32.totalorder %s2861_s21, 2 }
  0x21   : > { %s2974_s13 = scalar_select %p27_p2, %s2857_s20, %s29_s6  }
  0x22   : > { %p38_p13 = por %p37_p10, %p36_p9  ;;  %p4249_p0 = scmp.eq.s32.totalorder %s2921_s22, 1 }
  0x23   : > { %s198_s15 = sand.u32 1, %s2857_s20   ;;  %s2068_s16 = sshll.u32 %s2861_s21, 11 }
  0x24   : > { %p2978_p3 = por %p4249_p0, %p36_p9  ;;  %s2053_s17 = sshll.u32 %s198_s15, 7 }
  0x25   : > { %s2987_s29 = scalar_lea.hbm %s4174_s0, %s2068_s16  ;;  %s202_s28 = scalar_lea.vmem [#allocation2], %s2053_s17 }
  0x26   : > { %s4250_s14 = scalar_select %p2978_p3, 1, 0 }
  0x27   : > { %s209_s6 = sshll.u32 %s202_s28, 4  ;;  %p2989_p11 = pnand %p2619_p12, %p38_p13  ;;  %s2993_s6 = int_to_ptr.vmem [resolvable:$true] %s209_s6 }
  0x28   : > { %s2995_s8 = scalar_lea.sflag [#allocation3], %s198_s15  ;;  %s2765_s11 = scalar_lea.hbm %s2987_s29, 2048 }
  0x29   : > { %p2766_p5 = scmp.ne.s32.totalorder %s2987_s29, %s2765_s11  ;;  %p2767_p7 = pneg %p2989_p11 }
  0x2a   : > { %s2770_s17 = scalar_lea.hbm %s4174_s0, 4096  ;;  %p2771_p10 = scmp.lt.s32.totalorder %s2987_s29, %s4174_s0 }
  0x2b   : > { %p2768_p2 = pnand %p2767_p7, %p2766_p5  ;;  %p2772_p12 = scmp.lt.s32.totalorder %s2770_s17, %s2765_s11 }
  0x2d   : > { %p2769_p9 = pneg %p2768_p2  ;;  %p2773_p13 = por %p2772_p12, %p2771_p10 }
  0x2f   : > { %p2774_p0 = pnand %p2773_p13, %p2769_p9 }
  0x31   : > { %2777 = shalt.err (!%p2774_p0)
}
  0x32   : > { %s2778_s15 = scalar_lea.vmem %s2993_s6, 2048  ;;  %s2866_s28 = smov [#allocation2]  }
  0x33   : > { %p2779_p1 = scmp.ne.s32.totalorder %s2993_s6, %s2778_s15  ;;  %s2783_s9 = sshll.u32 %s2866_s28, 4  ;;  %s2784_s9 = int_to_ptr.vmem [resolvable:$false] %s2783_s9 }
  0x34   : > { %s2785_s12 = scalar_lea.vmem %s2784_s9, 4096  ;;  %p2786_p2 = scmp.lt.s32.totalorder %s2993_s6, %s2784_s9 }
  0x35   : > { %p2781_p6 = pnand %p2779_p1, %p2767_p7  ;;  %p2787_p3 = scmp.lt.s32.totalorder %s2785_s12, %s2778_s15 }
  0x37   : > { %p2782_p5 = pneg %p2781_p6  ;;  %p2788_p4 = por %p2787_p3, %p2786_p2 }
  0x39   : > { %p2789_p8 = pnand %p2788_p4, %p2782_p5 }
  0x3b   : > { %2792 = shalt.err (!%p2789_p8)
}
  0x3c   : > { %s4252_s11 = smov 128   ;;  %p4253_p1 = scmp.ne.s32.totalorder %s4247_s26, 0 }
  0x3d   : > { %2613 = dma.hbm_to_vmem [thread:$0]  (!%p2989_p11), %s2987_s29, 2048, %s2993_s6, %s2995_s8, %s4252_s11, %s4252_s11, %s2865_s10  }
  0x3e   : > { %221 = sbr.rel (%p4253_p1) target bundleno = 750 (0x2ee), region = 40 }
  0x43   : > { %s3022_s16 = sand.u32 1, %s2853_s19   ;;  %p4254_p4 = scmp.ne.s32.totalorder %s4245_s24, 0 }
  0x44   : > { %s2057_s9 = sshll.u32 %s3022_s16, 7  ;;  %s224_s17 = scalar_lea.sflag [#allocation3], %s3022_s16 }
  0x45   : > { %s3028_s7 = scalar_lea.vmem [#allocation2], %s2057_s9 }
  0x46   : > { %2836 = dma.done.wait (%p4254_p4), %s224_s17, 2048  }
  0x47   : > { %2838 = vsyncadd (%p4254_p4), %s224_s17, 4294965248  ;;  %p4255_p6 = scmp.eq.s32.totalorder %s2921_s22, 0 }
  0x49   : > { %2840 = dma.done.wait (%p4255_p6), [#allocation6], 2048   ;;  %p4256_p8 = pmov %p4255_p6 }
  0x4a   : > { %v260_v0 = vld [vmem:[%s3028_s7] sm:$0xff]  ;;  %v262_v1 = vld [vmem:[%s3028_s7 + $0x10] sm:$0xff]  ;;  %v261_v2 = vld [vmem:[%s3028_s7 + $0x8] sm:$0xff]  ;;  %s4051_s23 = scalar_lea.vmem [#allocation7], %s2057_s9  ;;  %s2069_s27 = sshll.u32 %s2921_s22, 11 }
  0x4b   : > { %2842 = vsyncadd (%p4256_p8), [#allocation6], 4294965248  ;;  %276 = vadd.xlane.f32.xlu0 %v260_v0  ;;  %280 = vadd.xlane.f32.xlu1 %v262_v1  ;;  %v263_v3 = vld [vmem:[%s3028_s7 + $0x18] sm:$0xff]  ;;  %v264_v4 = vld [vmem:[%s3028_s7 + $0x20] sm:$0xff]  ;;  %s1966_s15 = sshll.u32 %s4051_s23, 4  ;;  %s4126_s11 = scalar_lea.hbm %s4179_s5, %s2069_s27  ;;  %s4128_s15 = int_to_ptr.vmem [resolvable:$true] %s1966_s15 }
  0x4c   : > { %v265_v5 = vld [vmem:[%s3028_s7 + $0x28] sm:$0xff]  ;;  %v266_v6 = vld [vmem:[%s3028_s7 + $0x30] sm:$0xff]  ;;  %v267_v7 = vld [vmem:[%s3028_s7 + $0x38] sm:$0xff]  ;;  %s1953_s22 = scalar_lea.sflag [#allocation4], %s3022_s16  ;;  %s2793_s9 = scalar_lea.vmem %s4128_s15, 2048 }
  0x4d   : > { %v268_v8 = vld [vmem:[%s3028_s7 + $0x40] sm:$0xff]  ;;  %v269_v9 = vld [vmem:[%s3028_s7 + $0x48] sm:$0xff]  ;;  %v270_v10 = vld [vmem:[%s3028_s7 + $0x50] sm:$0xff]  ;;  %p2794_p3 = scmp.ne.s32.totalorder %s4128_s15, %s2793_s9  ;;  %p4341_p11 = scmp.ne.s32.totalorder %s4250_s14, 0 }
  0x4e   : > { %v3050_v11 = vld [vmem:[%s3028_s7 + $0x58] sm:$0xff]  ;;  %v3054_v12 = vld [vmem:[%s3028_s7 + $0x60] sm:$0xff]  ;;  %v3057_v13 = vld [vmem:[%s3028_s7 + $0x68] sm:$0xff]  ;;  %s2867_s17 = smov [#allocation7]  }
  0x4f   : > { %278 = vadd.xlane.f32.xlu0 %v261_v2  ;;  %282 = vadd.xlane.f32.xlu1 %v263_v3  ;;  %v3062_v14 = vld [vmem:[%s3028_s7 + $0x70] sm:$0xff]  ;;  %v3065_v15 = vld [vmem:[%s3028_s7 + $0x78] sm:$0xff]  ;;  %p2795_p7 = pnand %p2794_p3, %p4341_p11  ;;  %s2797_s24 = sshll.u32 %s2867_s17, 4  ;;  %s2798_s24 = int_to_ptr.vmem [resolvable:$false] %s2797_s24 }
  0x50   : > { %v626_v62 = vld [vmem:[#allocation5 + $0x78] sm:$0xff]  ;;  %s2799_s26 = scalar_lea.vmem %s2798_s24, 4096  ;;  %p2800_p10 = scmp.lt.s32.totalorder %s4128_s15, %s2798_s24 }
  0x51   : > { %p2796_p9 = pneg %p2795_p7  ;;  %p2801_p12 = scmp.lt.s32.totalorder %s2799_s26, %s2793_s9 }
  0x53   : > { %284 = vadd.xlane.f32.xlu0 %v264_v4  ;;  %286 = vadd.xlane.f32.xlu1 %v265_v5  ;;  %p2802_p13 = por %p2801_p12, %p2800_p10 }
  0x55   : > { %p2803_p0 = pnand %p2802_p13, %p2796_p9 }
  0x57   : > { %288 = vadd.xlane.f32.xlu0 %v266_v6  ;;  %290 = vadd.xlane.f32.xlu1 %v267_v7 }
  0x5b   : > { %292 = vadd.xlane.f32.xlu0 %v268_v8  ;;  %294 = vadd.xlane.f32.xlu1 %v269_v9 }
  0x5f   : > { %296 = vadd.xlane.f32.xlu0 %v270_v10  ;;  %298 = vadd.xlane.f32.xlu1 %v3050_v11 }
  0x63   : > { %300 = vadd.xlane.f32.xlu0 %v3054_v12  ;;  %302 = vadd.xlane.f32.xlu1 %v3057_v13 }
  0x67   : > { %304 = vadd.xlane.f32.xlu0 %v3062_v14  ;;  %306 = vadd.xlane.f32.xlu1 %v3065_v15 }
  0xd4   : > { %v277_v16 = vpop.xlane.xlu0 %276  ;;  %v281_v17 = vpop.xlane.xlu1 %280 }
  0xd5   : > { %v309_v18 = vmul.f32 0.0078125, %v277_v16  ;;  %v311_v19 = vmul.f32 0.0078125, %v281_v17 }
  0xd7   : > { %v3069_v20 = vsub.f32 %v260_v0, %v309_v18  ;;  %v3071_v21 = vsub.f32 %v262_v1, %v311_v19  ;;  %v3114_v1 = vand.u32 4294901760, %v626_v62 }
  0xd8   : > { %v279_v22 = vpop.xlane.xlu0 %278  ;;  %v283_v23 = vpop.xlane.xlu1 %282 }
  0xd9   : > { %v310_v24 = vmul.f32 0.0078125, %v279_v22  ;;  %v341_v25 = vmul.f32 %v3069_v20, %v3069_v20  ;;  %v312_v26 = vmul.f32 0.0078125, %v283_v23  ;;  %v343_v29 = vmul.f32 %v3071_v21, %v3071_v21  ;;  %2262 = vmatprep.subr.mxu0 %v3114_v1 }
  0xda   : > { %2263 = vmatpush3.msra.mxu0 %v3114_v1 }
  0xdb   : > { %v3075_v27 = vsub.f32 %v261_v2, %v310_v24  ;;  %357 = vadd.xlane.f32.xlu0 %v341_v25  ;;  %v3077_v28 = vsub.f32 %v263_v3, %v312_v26 }
  0xdc   : > { %v285_v30 = vpop.xlane.xlu0 %284  ;;  %v287_v31 = vpop.xlane.xlu1 %286 }
  0xdd   : > { %v313_v32 = vmul.f32 0.0078125, %v285_v30  ;;  %v342_v33 = vmul.f32 %v3075_v27, %v3075_v27  ;;  %v314_v34 = vmul.f32 0.0078125, %v287_v31  ;;  %v344_v37 = vmul.f32 %v3077_v28, %v3077_v28  ;;  %v623_v31 = vld [vmem:[#allocation5 + $0x60] sm:$0xff] }
  0xdf   : > { %v3083_v35 = vsub.f32 %v264_v4, %v313_v32  ;;  %361 = vadd.xlane.f32.xlu0 %v343_v29  ;;  %359 = vadd.xlane.f32.xlu1 %v342_v33  ;;  %v3085_v36 = vsub.f32 %v265_v5, %v314_v34  ;;  %v625_v5 = vld [vmem:[#allocation5 + $0x70] sm:$0xff] }
  0xe0   : > { %v289_v38 = vpop.xlane.xlu0 %288  ;;  %v291_v39 = vpop.xlane.xlu1 %290 }
  0xe1   : > { %v315_v40 = vmul.f32 0.0078125, %v289_v38  ;;  %v345_v41 = vmul.f32 %v3083_v35, %v3083_v35  ;;  %v316_v42 = vmul.f32 0.0078125, %v291_v39  ;;  %v346_v45 = vmul.f32 %v3085_v36, %v3085_v36 }
  0xe3   : > { %v3091_v43 = vsub.f32 %v266_v6, %v315_v40  ;;  %363 = vadd.xlane.f32.xlu1 %v344_v37  ;;  %365 = vadd.xlane.f32.xlu0 %v345_v41  ;;  %v3093_v44 = vsub.f32 %v267_v7, %v316_v42  ;;  %v3119_v6 = vsub.f32 %v626_v62, %v3114_v1  ;;  %v3121_v7 = vand.u32 4294901760, %v625_v5 }
  0xe4   : > { %v293_v46 = vpop.xlane.xlu0 %292  ;;  %v295_v47 = vpop.xlane.xlu1 %294  ;;  %v3163_v37 = vand.u32 4294901760, %v623_v31 }
  0xe5   : > { %v317_v48 = vmul.f32 0.0078125, %v293_v46  ;;  %v347_v49 = vmul.f32 %v3091_v43, %v3091_v43  ;;  %v318_v50 = vmul.f32 0.0078125, %v295_v47  ;;  %v348_v53 = vmul.f32 %v3093_v44, %v3093_v44  ;;  %2264 = vmatprep.subr.mxu0 %v3121_v7 }
  0xe6   : > { %v3133_v17 = vand.u32 4294901760, %v3119_v6  ;;  %v3136_v18 = vsub.f32 %v625_v5, %v3121_v7  ;;  %2265 = vmatpush3.msra.mxu0 %v3121_v7  ;;  %v3173_v39 = vsub.f32 %v623_v31, %v3163_v37  ;;  %v616_v31 = vld [vmem:[#allocation5 + $0x28] sm:$0xff] }
  0xe7   : > { %v3099_v51 = vsub.f32 %v268_v8, %v317_v48  ;;  %367 = vadd.xlane.f32.xlu1 %v346_v45  ;;  %369 = vadd.xlane.f32.xlu0 %v347_v49  ;;  %v3101_v52 = vsub.f32 %v269_v9, %v318_v50  ;;  %v622_v45 = vld [vmem:[#allocation5 + $0x58] sm:$0xff]  ;;  %v621_v49 = vld [vmem:[#allocation5 + $0x50] sm:$0xff] }
  0xe8   : > { %v297_v54 = vpop.xlane.xlu0 %296  ;;  %v299_v55 = vpop.xlane.xlu1 %298  ;;  %4257 = vst [vmem:[#allocation11_spill] sm:$0xff] %v3133_v17  ;;  %v879_v23 = vsub.f32 %v3119_v6, %v3133_v17  ;;  %v3145_v24 = vand.u32 4294901760, %v3136_v18  ;;  %v3181_v42 = vand.u32 4294901760, %v3173_v39  ;;  %v3186_v48 = vand.u32 4294901760, %v622_v45 }
  0xe9   : > { %v319_v56 = vmul.f32 0.0078125, %v297_v54  ;;  %v349_v57 = vmul.f32 %v3099_v51, %v3099_v51  ;;  %v320_v58 = vmul.f32 0.0078125, %v299_v55  ;;  %v350_v61 = vmul.f32 %v3101_v52, %v3101_v52 }
  0xea   : > { %4258 = vst [vmem:[#allocation12_spill] sm:$0xff] %v3145_v24  ;;  %v880_v32 = vand.u32 4294901760, %v879_v23  ;;  %v886_v33 = vsub.f32 %v3136_v18, %v3145_v24  ;;  %4260 = vst [vmem:[#allocation14_spill] sm:$0xff] %v3181_v42  ;;  %v900_v47 = vsub.f32 %v3173_v39, %v3181_v42  ;;  %v3191_v54 = vand.u32 4294901760, %v621_v49 }
  0xeb   : > { %v3107_v59 = vsub.f32 %v270_v10, %v319_v56  ;;  %371 = vadd.xlane.f32.xlu1 %v348_v53  ;;  %373 = vadd.xlane.f32.xlu0 %v349_v57  ;;  %v3110_v60 = vsub.f32 %v3050_v11, %v320_v58  ;;  %v3189_v53 = vsub.f32 %v622_v45, %v3186_v48 }
  0xec   : > { %v301_v63 = vpop.xlane.xlu0 %300  ;;  %v303_v0 = vpop.xlane.xlu1 %302  ;;  %2318 = vmatprep.subr.mxu1 %v880_v32  ;;  %v901_v50 = vand.u32 4294901760, %v900_v47  ;;  %v3199_v56 = vsub.f32 %v621_v49, %v3191_v54 }
  0xed   : > { %v321_v2 = vmul.f32 0.0078125, %v301_v63  ;;  %v351_v3 = vmul.f32 %v3107_v59, %v3107_v59  ;;  %v322_v4 = vmul.f32 0.0078125, %v303_v0  ;;  %v352_v10 = vmul.f32 %v3110_v60, %v3110_v60  ;;  %2319 = vmatpush3.msra.mxu1 %v880_v32 }
  0xee   : > { %v3196_v55 = vand.u32 4294901760, %v3189_v53  ;;  %v3206_v58 = vand.u32 4294901760, %v3199_v56 }
  0xef   : > { %v3125_v8 = vsub.f32 %v3054_v12, %v321_v2  ;;  %375 = vadd.xlane.f32.xlu1 %v350_v61  ;;  %377 = vadd.xlane.f32.xlu0 %v351_v3  ;;  %v3128_v9 = vsub.f32 %v3057_v13, %v322_v4  ;;  %v624_v13 = vld [vmem:[#allocation5 + $0x68] sm:$0xff]  ;;  %v619_v2 = vld [vmem:[#allocation5 + $0x40] sm:$0xff] }
  0xf0   : > { %v305_v11 = vpop.xlane.xlu0 %304  ;;  %v307_v16 = vpop.xlane.xlu1 %306  ;;  %v3147_v25 = vand.u32 4294901760, %v624_v13  ;;  %4261 = vst [vmem:[#allocation15_spill] sm:$0xff] %v3196_v55  ;;  %v907_v57 = vsub.f32 %v3189_v53, %v3196_v55  ;;  %4262 = vst [vmem:[#allocation16_spill] sm:$0xff] %v3206_v58  ;;  %v620_v61 = vld [vmem:[#allocation5 + $0x48] sm:$0xff]  ;;  %v914_v0 = vsub.f32 %v3199_v56, %v3206_v58  ;;  %v3215_v4 = vand.u32 4294901760, %v619_v2 }
  0xf1   : > { %v323_v12 = vmul.f32 0.0078125, %v305_v11  ;;  %v353_v19 = vmul.f32 %v3125_v8, %v3125_v8  ;;  %v324_v22 = vmul.f32 0.0078125, %v307_v16  ;;  %v354_v30 = vmul.f32 %v3128_v9, %v3128_v9 }
  0xf2   : > { %v3161_v34 = vsub.f32 %v624_v13, %v3147_v25  ;;  %2266 = vmatprep.subr.mxu0 %v3147_v25  ;;  %v3208_v62 = vand.u32 4294901760, %v620_v61  ;;  %v908_v63 = vand.u32 4294901760, %v907_v57  ;;  %v915_v5 = vand.u32 4294901760, %v914_v0  ;;  %v614_v57 = vld [vmem:[#allocation5 + $0x18] sm:$0xff] }
  0xf3   : > { %v3151_v26 = vsub.f32 %v3062_v14, %v323_v12  ;;  %379 = vadd.xlane.f32.xlu1 %v352_v10  ;;  %381 = vadd.xlane.f32.xlu0 %v353_v19  ;;  %v3154_v29 = vsub.f32 %v3065_v15, %v324_v22  ;;  %v887_v15 = vand.u32 4294901760, %v886_v33  ;;  %v618_v10 = vld [vmem:[#allocation5 + $0x38] sm:$0xff]  ;;  %v3223_v16 = vsub.f32 %v619_v2, %v3215_v4  ;;  %v617_v19 = vld [vmem:[#allocation5 + $0x30] sm:$0xff] }
  0xf4   : > { %2267 = vmatpush3.msra.mxu0 %v3147_v25  ;;  %v3170_v38 = vand.u32 4294901760, %v3161_v34  ;;  %v3213_v3 = vsub.f32 %v620_v61, %v3208_v62  ;;  %v3225_v12 = vand.u32 4294901760, %v618_v10  ;;  %v3269_v2 = vand.u32 4294901760, %v614_v57 }
  0xf5   : > { %v355_v14 = vmul.f32 %v3151_v26, %v3151_v26  ;;  %2268 = vmatprep.subr.mxu0 %v3163_v37  ;;  %v356_v40 = vmul.f32 %v3154_v29, %v3154_v29  ;;  %2320 = vmatprep.subr.mxu1 %v887_v15  ;;  %v3232_v13 = vand.u32 4294901760, %v3223_v16 }
  0xf6   : > { %4259 = vst [vmem:[#allocation13_spill] sm:$0xff] %v3170_v38  ;;  %v893_v41 = vsub.f32 %v3161_v34, %v3170_v38  ;;  %2269 = vmatpush3.msra.mxu0 %v3163_v37  ;;  %2321 = vmatpush3.msra.mxu1 %v887_v15  ;;  %v3220_v11 = vand.u32 4294901760, %v3213_v3  ;;  %v3235_v23 = vsub.f32 %v618_v10, %v3225_v12  ;;  %v613_v10 = vld [vmem:[#allocation5 + $0x10] sm:$0xff] }
  0xf7   : > { %383 = vadd.xlane.f32.xlu1 %v354_v30  ;;  %385 = vadd.xlane.f32.xlu0 %v355_v14  ;;  %4264 = vst [vmem:[#allocation18_spill] sm:$0xff] %v3232_v13  ;;  %v3237_v30 = vand.u32 4294901760, %v617_v19  ;;  %v928_v33 = vsub.f32 %v3223_v16, %v3232_v13 }
  0xf8   : > { %v894_v46 = vand.u32 4294901760, %v893_v41  ;;  %2270 = vmatprep.subr.mxu0 %v3186_v48  ;;  %4263 = vst [vmem:[#allocation17_spill] sm:$0xff] %v3220_v11  ;;  %v921_v22 = vsub.f32 %v3213_v3, %v3220_v11  ;;  %v3244_v14 = vand.u32 4294901760, %v3235_v23  ;;  %v615_v41 = vld [vmem:[#allocation5 + $0x20] sm:$0xff] }
  0xf9   : > { %2271 = vmatpush3.msra.mxu0 %v3186_v48  ;;  %v3247_v15 = vsub.f32 %v617_v19, %v3237_v30  ;;  %v929_v45 = vand.u32 4294901760, %v928_v33  ;;  %v3258_v49 = vand.u32 4294901760, %v615_v41 }
  0xfa   : > { %2322 = vmatprep.subr.mxu1 %v894_v46  ;;  %2272 = vmatprep.subr.mxu0 %v3191_v54  ;;  %v922_v32 = vand.u32 4294901760, %v921_v22  ;;  %4265 = vst [vmem:[#allocation19_spill] sm:$0xff] %v3244_v14 }
  0xfb   : > { %387 = vadd.xlane.f32.xlu1 %v356_v40  ;;  %2323 = vmatpush3.msra.mxu1 %v894_v46  ;;  %4266 = vst [vmem:[#allocation20_spill] sm:$0xff] %v3247_v15  ;;  %v3250_v40 = vand.u32 4294901760, %v616_v31  ;;  %v935_v46 = vsub.f32 %v3235_v23, %v3244_v14  ;;  %v3256_v47 = vand.u32 4294901760, %v3247_v15  ;;  %v3267_v0 = vsub.f32 %v615_v41, %v3258_v49  ;;  %v612_v41 = vld [vmem:[#allocation5 + $0x8] sm:$0xff] }
  0xfc   : > { %2324 = vmatprep.subr.mxu1 %v901_v50  ;;  %2273 = vmatpush3.msra.mxu0 %v3191_v54 }
  0xfd   : > { %2325 = vmatpush3.msra.mxu1 %v901_v50  ;;  %2274 = vmatprep.subr.mxu0 %v3208_v62  ;;  %4267 = vst [vmem:[#allocation21_spill] sm:$0xff] %v3256_v47  ;;  %v3261_v50 = vsub.f32 %v616_v31, %v3250_v40  ;;  %v936_v61 = vand.u32 4294901760, %v935_v46  ;;  %4269 = vst [vmem:[#allocation23_spill] sm:$0xff] %v3267_v0  ;;  %v3277_v22 = vand.u32 4294901760, %v3267_v0 }
  0xfe   : > { %2326 = vmatprep.subr.mxu1 %v908_v63  ;;  %2275 = vmatpush3.msra.mxu0 %v3208_v62  ;;  %v3280_v31 = vsub.f32 %v614_v57, %v3269_v2 }
  0xff   : > { %2327 = vmatpush3.msra.mxu1 %v908_v63  ;;  %2276 = vmatprep.subr.mxu0 %v3215_v4  ;;  %4268 = vst [vmem:[#allocation22_spill] sm:$0xff] %v3261_v50  ;;  %v942_v63 = vsub.f32 %v3247_v15, %v3256_v47  ;;  %4271 = vst [vmem:[#allocation25_spill] sm:$0xff] %v3277_v22 }
 0x100   : > { %2328 = vmatprep.subr.mxu1 %v915_v5  ;;  %2277 = vmatpush3.msra.mxu0 %v3215_v4  ;;  %4272 = vst [vmem:[#allocation26_spill] sm:$0xff] %v3280_v31  ;;  %v3291_v46 = vand.u32 4294901760, %v3280_v31 }
 0x101   : > { %2329 = vmatpush3.msra.mxu1 %v915_v5  ;;  %2278 = vmatprep.subr.mxu0 %v3225_v12  ;;  %v3273_v5 = vand.u32 4294901760, %v3261_v50  ;;  %v943_v19 = vand.u32 4294901760, %v942_v63  ;;  %v3296_v63 = vand.u32 4294901760, %v612_v41 }
 0x102   : > { %2279 = vmatpush3.msra.mxu0 %v3225_v12  ;;  %2330 = vmatprep.subr.mxu1 %v922_v32  ;;  %4274 = vst [vmem:[#allocation28_spill] sm:$0xff] %v3291_v46  ;;  %v963_v14 = vsub.f32 %v3280_v31, %v3291_v46 }
 0x103   : > { %2280 = vmatprep.subr.mxu0 %v3237_v30  ;;  %2331 = vmatpush3.msra.mxu1 %v922_v32  ;;  %4270 = vst [vmem:[#allocation24_spill] sm:$0xff] %v3273_v5  ;;  %v3282_v32 = vand.u32 4294901760, %v613_v10  ;;  %v949_v33 = vsub.f32 %v3261_v50, %v3273_v5  ;;  %4276 = vst [vmem:[#allocation30_spill] sm:$0xff] %v3296_v63  ;;  %v611_v5 = vld [vmem:[#allocation5] sm:$0xff]  ;;  %v3306_v13 = vsub.f32 %v612_v41, %v3296_v63 }
 0x104   : > { %2281 = vmatpush3.msra.mxu0 %v3237_v30  ;;  %2332 = vmatprep.subr.mxu1 %v929_v45 }
 0x105   : > { %2282 = vmatprep.subr.mxu0 %v3250_v40  ;;  %2333 = vmatpush3.msra.mxu1 %v929_v45  ;;  %4273 = vst [vmem:[#allocation27_spill] sm:$0xff] %v3282_v32  ;;  %v956_v45 = vsub.f32 %v3267_v0, %v3277_v22  ;;  %v3294_v57 = vsub.f32 %v613_v10, %v3282_v32  ;;  %4278 = vst [vmem:[#allocation32_spill] sm:$0xff] %v3306_v13  ;;  %v3309_v10 = vand.u32 4294901760, %v611_v5 }
 0x106   : > { %2283 = vmatpush3.msra.mxu0 %v3250_v40  ;;  %2334 = vmatprep.subr.mxu1 %v936_v61 }
 0x107   : > { %2284 = vmatprep.subr.mxu0 %v3258_v49  ;;  %2335 = vmatpush3.msra.mxu1 %v936_v61  ;;  %4275 = vst [vmem:[#allocation29_spill] sm:$0xff] %v3294_v57  ;;  %v950_v61 = vand.u32 4294901760, %v949_v33  ;;  %v957_v47 = vand.u32 4294901760, %v956_v45  ;;  %v3303_v22 = vand.u32 4294901760, %v3294_v57  ;;  %4279 = vst [vmem:[#allocation33_spill] sm:$0xff] %v3309_v10  ;;  %v3315_v45 = vand.u32 4294901760, %v3306_v13 }
 0x108   : > { %2285 = vmatpush3.msra.mxu0 %v3258_v49  ;;  %2336 = vmatprep.subr.mxu1 %v943_v19  ;;  %v3319_v41 = vsub.f32 %v611_v5, %v3309_v10 }
 0x109   : > { %2286 = vmatprep.subr.mxu0 %v3269_v2  ;;  %2337 = vmatpush3.msra.mxu1 %v943_v19  ;;  %4277 = vst [vmem:[#allocation31_spill] sm:$0xff] %v3303_v22  ;;  %v964_v19 = vand.u32 4294901760, %v963_v14  ;;  %v970_v33 = vsub.f32 %v3294_v57, %v3303_v22  ;;  %4280 = vst [vmem:[#allocation34_spill] sm:$0xff] %v3315_v45 }
 0x10a   : > { %2287 = vmatpush3.msra.mxu0 %v3269_v2  ;;  %2338 = vmatprep.subr.mxu1 %v950_v61  ;;  %4281 = vst [vmem:[#allocation35_spill] sm:$0xff] %v3319_v41  ;;  %v3326_v14 = vand.u32 4294901760, %v3319_v41 }
 0x10b   : > { %2288 = vmatprep.subr.mxu0 %v3282_v32  ;;  %2339 = vmatpush3.msra.mxu1 %v950_v61  ;;  %v971_v46 = vand.u32 4294901760, %v970_v33  ;;  %v977_v61 = vsub.f32 %v3306_v13, %v3315_v45 }
 0x10c   : > { %2289 = vmatpush3.msra.mxu0 %v3282_v32  ;;  %2340 = vmatprep.subr.mxu1 %v957_v47  ;;  %4282 = vst [vmem:[#allocation36_spill] sm:$0xff] %v3326_v14  ;;  %v984_v5 = vsub.f32 %v3319_v41, %v3326_v14 }
 0x10d   : > { %2290 = vmatprep.subr.mxu0 %v3296_v63  ;;  %2341 = vmatpush3.msra.mxu1 %v957_v47  ;;  %v978_v22 = vand.u32 4294901760, %v977_v61 }
 0x10e   : > { %2291 = vmatpush3.msra.mxu0 %v3296_v63  ;;  %2342 = vmatprep.subr.mxu1 %v964_v19  ;;  %v985_v47 = vand.u32 4294901760, %v984_v5 }
 0x10f   : > { %2292 = vmatprep.subr.mxu0 %v3309_v10  ;;  %2343 = vmatpush3.msra.mxu1 %v964_v19 }
 0x110   : > { %2293 = vmatpush3.msra.mxu0 %v3309_v10  ;;  %2344 = vmatprep.subr.mxu1 %v971_v46 }
 0x111   : > { %2374 = vmatprep.subr.mxu0 %v3119_v6  ;;  %2345 = vmatpush3.msra.mxu1 %v971_v46 }
 0x112   : > { %2346 = vmatprep.subr.mxu1 %v978_v22 }
 0x113   : > { %2347 = vmatpush3.msra.mxu1 %v978_v22 }
 0x114   : > { %2348 = vmatprep.subr.mxu1 %v985_v47 }
 0x115   : > { %2349 = vmatpush3.msra.mxu1 %v985_v47 }
 0x116   : > { %2430 = vmatprep.subr.mxu1 %v3114_v1 }
 0x164   : > { %v358_v33 = vpop.xlane.xlu0 %357 }
 0x165   : > { %v389_v45 = vmul.f32 0.007874016, %v358_v33 }
 0x167   : > { %2659 = vrsqrt.f32 %v389_v45  ;;  %vm407_vm0 = vcmp.eq.f32.partialorder %v389_v45, inf  ;;  %vm409_vm1 = vcmp.eq.f32.partialorder %v389_v45, 0.0  ;;  %v410_v17 = vand.u32 2147483648, %v389_v45 }
 0x168   : > { %v360_v11 = vpop.xlane.xlu1 %359  ;;  %v362_v58 = vpop.xlane.xlu0 %361 }
 0x169   : > { %v390_v55 = vmul.f32 0.007874016, %v360_v11  ;;  %v391_v19 = vmul.f32 0.007874016, %v362_v58 }
 0x16b   : > { %2661 = vrsqrt.f32 %v390_v55  ;;  %vm414_vm2 = vcmp.eq.f32.partialorder %v390_v55, inf  ;;  %vm416_vm3 = vcmp.eq.f32.partialorder %v390_v55, 0.0  ;;  %vm421_vm4 = vcmp.eq.f32.partialorder %v391_v19, inf }
 0x16c   : > { %2663 = vrsqrt.f32 %v391_v19  ;;  %v364_v61 = vpop.xlane.xlu1 %363  ;;  %v366_v42 = vpop.xlane.xlu0 %365  ;;  %vm423_vm5 = vcmp.eq.f32.partialorder %v391_v19, 0.0  ;;  %v424_v57 = vand.u32 2147483648, %v391_v19 }
 0x16d   : > { %v3332_v14 = vmul.f32 0.007874016, %v364_v61  ;;  %v3334_v46 = vmul.f32 0.007874016, %v366_v42 }
 0x16f   : > { %2665 = vrsqrt.f32 %v3332_v14  ;;  %vm428_vm6 = vcmp.eq.f32.partialorder %v3332_v14, inf  ;;  %vm430_vm7 = vcmp.eq.f32.partialorder %v3332_v14, 0.0  ;;  %vm435_vm8 = vcmp.eq.f32.partialorder %v3334_v46, inf }
 0x170   : > { %2667 = vrsqrt.f32 %v3334_v46  ;;  %v368_v22 = vpop.xlane.xlu1 %367  ;;  %v370_v5 = vpop.xlane.xlu0 %369  ;;  %vm437_vm9 = vcmp.eq.f32.partialorder %v3334_v46, 0.0 }
 0x171   : > { %v3338_v47 = vmul.f32 0.007874016, %v368_v22  ;;  %v3340_v33 = vmul.f32 0.007874016, %v370_v5  ;;  %v417_v5 = vand.u32 2147483648, %v390_v55 }
 0x173   : > { %2669 = vrsqrt.f32 %v3338_v47  ;;  %vm442_vm10 = vcmp.eq.f32.partialorder %v3338_v47, inf  ;;  %vm444_vm11 = vcmp.eq.f32.partialorder %v3338_v47, 0.0  ;;  %vm449_vm12 = vcmp.eq.f32.partialorder %v3340_v33, inf }
 0x174   : > { %v2660_v58 = vpop.eup %2659  ;;  %2671 = vrsqrt.f32 %v3340_v33  ;;  %v372_v11 = vpop.xlane.xlu1 %371  ;;  %vm451_vm13 = vcmp.eq.f32.partialorder %v3340_v33, 0.0 }
 0x175   : > { %v374_v61 = vpop.xlane.xlu0 %373  ;;  %v406_v38 = vmul.f32 %v2660_v58, %v389_v45  ;;  %v3344_v42 = vmul.f32 0.007874016, %v372_v11 }
 0x176   : > { %v3346_v24 = vmul.f32 0.007874016, %v374_v61 }
 0x177   : > { %v408_v22 = vsel %vm407_vm0, %v389_v45, %v406_v38  ;;  %2673 = vrsqrt.f32 %v3344_v42  ;;  %v431_v45 = vand.u32 2147483648, %v3332_v14  ;;  %vm456_vm14 = vcmp.eq.f32.partialorder %v3344_v42, inf }
 0x178   : > { %v2662_v41 = vpop.eup %2661  ;;  %v411_v13 = vsel %vm409_vm1, %v410_v17, %v408_v22  ;;  %2675 = vrsqrt.f32 %v3346_v24  ;;  %v376_v58 = vpop.xlane.xlu1 %375  ;;  %vm458_vm15 = vcmp.eq.f32.partialorder %v3344_v42, 0.0  ;;  %vm463_vm0 = vcmp.eq.f32.partialorder %v3346_v24, inf }
 0x179   : > { %v378_v11 = vpop.xlane.xlu0 %377  ;;  %v2664_v31 = vpop.eup %2663  ;;  %v517_v61 = vadd.f32 1e-06, %v411_v13  ;;  %v413_v10 = vmul.f32 %v2662_v41, %v390_v55  ;;  %v3353_v0 = vmul.f32 0.007874016, %v376_v58  ;;  %vm465_vm1 = vcmp.eq.f32.partialorder %v3346_v24, 0.0 }
 0x17a   : > { %v420_v38 = vmul.f32 %v2664_v31, %v391_v19  ;;  %v3355_v63 = vmul.f32 0.007874016, %v378_v11  ;;  %v438_v31 = vand.u32 2147483648, %v3334_v46 }
 0x17b   : > { %2677 = vrcp.f32 %v517_v61  ;;  %v415_v17 = vsel %vm414_vm2, %v390_v55, %v413_v10  ;;  %vm470_vm2 = vcmp.eq.f32.partialorder %v3353_v0, inf }
 0x17c   : > { %v2666_v13 = vpop.eup %2665  ;;  %v418_v41 = vsel %vm416_vm3, %v417_v5, %v415_v17  ;;  %v422_v22 = vsel %vm421_vm4, %v391_v19, %v420_v38  ;;  %2679 = vrsqrt.f32 %v3353_v0  ;;  %v380_v58 = vpop.xlane.xlu1 %379  ;;  %v445_v5 = vand.u32 2147483648, %v3338_v47 }
 0x17d   : > { %v2668_v50 = vpop.eup %2667  ;;  %v518_v11 = vadd.f32 1e-06, %v418_v41  ;;  %v425_v61 = vsel %vm423_vm5, %v424_v57, %v422_v22  ;;  %v427_v10 = vmul.f32 %v2666_v13, %v3332_v14  ;;  %2681 = vrsqrt.f32 %v3355_v63  ;;  %v382_v57 = vpop.xlane.xlu0 %381 }
 0x17e   : > { %v519_v32 = vadd.f32 1e-06, %v425_v61  ;;  %v434_v15 = vmul.f32 %v2668_v50, %v3334_v46  ;;  %vm472_vm3 = vcmp.eq.f32.partialorder %v3353_v0, 0.0  ;;  %vm477_vm4 = vcmp.eq.f32.partialorder %v3355_v63, inf }
 0x17f   : > { %2683 = vrcp.f32 %v518_v11  ;;  %v429_v55 = vsel %vm428_vm6, %v3332_v14, %v427_v10  ;;  %v3384_v11 = vmul.f32 0.007874016, %v380_v58  ;;  %v3388_v10 = vmul.f32 0.007874016, %v382_v57 }
 0x180   : > { %v2670_v19 = vpop.eup %2669  ;;  %2685 = vrcp.f32 %v519_v32  ;;  %v432_v38 = vsel %vm430_vm7, %v431_v45, %v429_v55  ;;  %v436_v50 = vsel %vm435_vm8, %v3334_v46, %v434_v15  ;;  %v384_v61 = vpop.xlane.xlu1 %383  ;;  %v452_v45 = vand.u32 2147483648, %v3340_v33 }
 0x181   : > { %v2672_v17 = vpop.eup %2671  ;;  %v520_v13 = vadd.f32 1e-06, %v432_v38  ;;  %v439_v41 = vsel %vm437_vm9, %v438_v31, %v436_v50  ;;  %v441_v22 = vmul.f32 %v2670_v19, %v3338_v47  ;;  %v3400_v55 = vmul.f32 0.007874016, %v384_v61 }
 0x182   : > { %v521_v32 = vadd.f32 1e-06, %v439_v41  ;;  %v448_v14 = vmul.f32 %v2672_v17, %v3340_v33  ;;  %v459_v17 = vand.u32 2147483648, %v3344_v42  ;;  %vm479_vm5 = vcmp.eq.f32.partialorder %v3355_v63, 0.0 }
 0x183   : > { %2687 = vrcp.f32 %v520_v13  ;;  %v443_v15 = vsel %vm442_vm10, %v3338_v47, %v441_v22  ;;  %v386_v13 = vpop.xlane.xlu0 %385  ;;  %vm484_vm6 = vcmp.eq.f32.partialorder %v3384_v11, inf  ;;  %vm486_vm7 = vcmp.eq.f32.partialorder %v3384_v11, 0.0 }
 0x184   : > { %v2674_v46 = vpop.eup %2673  ;;  %2689 = vrcp.f32 %v521_v32  ;;  %v446_v31 = vsel %vm444_vm11, %v445_v5, %v443_v15  ;;  %v450_v58 = vsel %vm449_vm12, %v3340_v33, %v448_v14  ;;  %v466_v33 = vand.u32 2147483648, %v3346_v24  ;;  %v388_v32 = vpop.xlane.xlu1 %387 }
 0x185   : > { %v2676_v57 = vpop.eup %2675  ;;  %v522_v19 = vadd.f32 1e-06, %v446_v31  ;;  %v453_v38 = vsel %vm451_vm13, %v452_v45, %v450_v58  ;;  %v455_v50 = vmul.f32 %v2674_v46, %v3344_v42  ;;  %2691 = vrsqrt.f32 %v3384_v11 }
 0x186   : > { %v462_v47 = vmul.f32 %v2676_v57, %v3346_v24  ;;  %2693 = vrsqrt.f32 %v3388_v10  ;;  %v523_v22 = vadd.f32 1e-06, %v453_v38  ;;  %v473_v15 = vand.u32 2147483648, %v3353_v0 }
 0x187   : > { %2695 = vrcp.f32 %v522_v19  ;;  %v457_v5 = vsel %vm456_vm14, %v3344_v42, %v455_v50  ;;  %v480_v57 = vand.u32 2147483648, %v3355_v63  ;;  %v487_v19 = vand.u32 2147483648, %v3384_v11 }
 0x188   : > { %v2678_v41 = vpop.eup %2677  ;;  %v464_v61 = vsel %vm463_vm0, %v3346_v24, %v462_v47  ;;  %v460_v45 = vsel %vm458_vm15, %v459_v17, %v457_v5  ;;  %2697 = vrsqrt.f32 %v3400_v55  ;;  %v3425_v24 = vmul.f32 0.007874016, %v386_v13 }
 0x189   : > { %v2680_v14 = vpop.eup %2679  ;;  %v467_v46 = vsel %vm465_vm1, %v466_v33, %v464_v61  ;;  %v3429_v42 = vmul.f32 0.007874016, %v388_v32  ;;  %v551_v38 = vmul.f32 %v2678_v41, %v3069_v20  ;;  %2699 = vrcp.f32 %v523_v22  ;;  %v3440_v33 = vld [vmem:[%s4175_s1] ss:$0 sm:$0xff] }
 0x18a   : > { %v469_v31 = vmul.f32 %v2680_v14, %v3353_v0  ;;  %v2682_v58 = vpop.eup %2681  ;;  %v524_v17 = vadd.f32 1e-06, %v460_v45  ;;  %v525_v61 = vadd.f32 1e-06, %v467_v46  ;;  %vm491_vm8 = vcmp.eq.f32.partialorder %v3388_v10, inf }
 0x18b   : > { %v476_v5 = vmul.f32 %v2682_v58, %v3355_v63  ;;  %2701 = vrsqrt.f32 %v3425_v24  ;;  %vm493_vm9 = vcmp.eq.f32.partialorder %v3388_v10, 0.0  ;;  %v494_v14 = vand.u32 2147483648, %v3388_v10 }
 0x18c   : > { %v2684_v50 = vpop.eup %2683  ;;  %v471_v47 = vsel %vm470_vm2, %v3353_v0, %v469_v31  ;;  %2703 = vrsqrt.f32 %v3429_v42  ;;  %v3455_v0 = vld [vmem:[%s4176_s2] ss:$0 sm:$0xff]  ;;  %v501_v45 = vand.u32 2147483648, %v3400_v55  ;;  %vm498_vm10 = vcmp.eq.f32.partialorder %v3400_v55, inf }
 0x18d   : > { %v2686_v13 = vpop.eup %2685  ;;  %v474_v20 = vsel %vm472_vm3, %v473_v15, %v471_v47  ;;  %v478_v22 = vsel %vm477_vm4, %v3355_v63, %v476_v5  ;;  %v573_v15 = vmul.f32 %v3440_v33, %v551_v38  ;;  %2705 = vrcp.f32 %v524_v17 }
 0x18e   : > { %v526_v41 = vadd.f32 1e-06, %v474_v20  ;;  %v481_v32 = vsel %vm479_vm5, %v480_v57, %v478_v22  ;;  %v552_v58 = vmul.f32 %v2684_v50, %v3075_v27  ;;  %v553_v47 = vmul.f32 %v2686_v13, %v3071_v21 }
 0x18f   : > { %v527_v31 = vadd.f32 1e-06, %v481_v32  ;;  %2707 = vrcp.f32 %v525_v61  ;;  %vm500_vm11 = vcmp.eq.f32.partialorder %v3400_v55, 0.0  ;;  %v508_v63 = vand.u32 2147483648, %v3425_v24 }
 0x190   : > { %v2688_v46 = vpop.eup %2687  ;;  %v595_v57 = vadd.f32 %v3455_v0, %v573_v15  ;;  %2709 = vrcp.f32 %v526_v41  ;;  %v574_v17 = vmul.f32 %v3440_v33, %v552_v58  ;;  %v575_v22 = vmul.f32 %v3440_v33, %v553_v47 }
 0x191   : > { %v2690_v5 = vpop.eup %2689  ;;  %v554_v20 = vmul.f32 %v2688_v46, %v3077_v28  ;;  %2711 = vrcp.f32 %v527_v31  ;;  %vm505_vm12 = vcmp.eq.f32.partialorder %v3425_v24, inf  ;;  %vm507_vm13 = vcmp.eq.f32.partialorder %v3425_v24, 0.0 }
 0x192   : > { %v2692_v38 = vpop.eup %2691  ;;  %v555_v27 = vmul.f32 %v2690_v5, %v3083_v35  ;;  %v3473_v13 = vand.u32 4294901760, %v595_v57  ;;  %v596_v28 = vadd.f32 %v3455_v0, %v574_v17  ;;  %v597_v41 = vadd.f32 %v3455_v0, %v575_v22 }
 0x193   : > { %v2694_v50 = vpop.eup %2693  ;;  %v483_v21 = vmul.f32 %v2692_v38, %v3384_v11  ;;  %v576_v61 = vmul.f32 %v3440_v33, %v554_v20  ;;  %vm512_vm14 = vcmp.eq.f32.partialorder %v3429_v42, inf  ;;  %vm514_vm15 = vcmp.eq.f32.partialorder %v3429_v42, 0.0 }
 0x194   : > { %v2696_v32 = vpop.eup %2695  ;;  %v490_v15 = vmul.f32 %v2694_v50, %v3388_v10  ;;  %v577_v46 = vmul.f32 %v3440_v33, %v555_v27  ;;  %2350 = vmatprep.mubr.f32.mxu1 %v3473_v13  ;;  %v3488_v31 = vsub.f32 %v595_v57, %v3473_v13  ;;  %v3498_v17 = vand.u32 4294901760, %v596_v28 }
 0x195   : > { %v485_v35 = vsel %vm484_vm6, %v3384_v11, %v483_v21  ;;  %v598_v58 = vadd.f32 %v3455_v0, %v576_v61  ;;  %v556_v47 = vmul.f32 %v2696_v32, %v3085_v36  ;;  %v2698_v5 = vpop.eup %2697  ;;  %v3500_v22 = vand.u32 4294901760, %v597_v41 }
 0x196   : > { %v488_v20 = vsel %vm486_vm7, %v487_v19, %v485_v35  ;;  %v492_v38 = vsel %vm491_vm8, %v3388_v10, %v490_v15  ;;  %v497_v36 = vmul.f32 %v2698_v5, %v3400_v55  ;;  %v717_v50 = vand.u32 4294901760, %v3488_v31  ;;  %2351 = vmatmul.mubr.f32.vlgmr.msra.gmra.mxu1 %v3498_v17  ;;  %v2700_v32 = vpop.eup %2699 }
 0x197   : > { %v528_v57 = vadd.f32 1e-06, %v488_v20  ;;  %v495_v27 = vsel %vm493_vm9, %v494_v14, %v492_v38  ;;  %v3507_v19 = vand.u32 4294901760, %v598_v58  ;;  %v599_v21 = vadd.f32 %v3455_v0, %v577_v46  ;;  %2353 = vmatprep.mubr.f32.mxu1 %v3500_v22  ;;  %2431 = vmatpush3.msra.mxu1 %v3114_v1 }
 0x198   : > { %v529_v11 = vadd.f32 1e-06, %v495_v27  ;;  %v3511_v61 = vsub.f32 %v596_v28, %v3498_v17  ;;  %v499_v10 = vsel %vm498_vm10, %v3400_v55, %v497_v36  ;;  %v718_v14 = vsub.f32 %v3488_v31, %v717_v50  ;;  %v2702_v46 = vpop.eup %2701  ;;  %2432 = vmatprep.subr.mxu1 %v3121_v7 }
 0x199   : > { %2713 = vrcp.f32 %v528_v57  ;;  %v578_v15 = vmul.f32 %v3440_v33, %v556_v47  ;;  %v502_v28 = vsel %vm500_vm11, %v501_v45, %v499_v10  ;;  %v3525_v35 = vand.u32 4294901760, %v599_v21  ;;  %v2704_v20 = vpop.eup %2703  ;;  %2433 = vmatpush3.msra.mxu1 %v3121_v7 }
 0x19a   : > { %2715 = vrcp.f32 %v529_v11  ;;  %v4237_v5 = vand.u32 4294901760, %v3511_v61  ;;  %v530_v38 = vadd.f32 1e-06, %v502_v28  ;;  %v504_v57 = vmul.f32 %v2702_v46, %v3425_v24  ;;  %2354 = vmatmul.mubr.f32.gmra.mxu1 %v3507_v19  ;;  %2434 = vmatprep.subr.mxu1 %v3147_v25  ;;  %v2706_v10 = vpop.eup %2705 }
 0x19b   : > { %v719_v27 = vand.u32 4294901760, %v718_v14  ;;  %v600_v47 = vadd.f32 %v3455_v0, %v578_v15  ;;  %v511_v36 = vmul.f32 %v2704_v20, %v3429_v42  ;;  %v515_v55 = vand.u32 2147483648, %v3429_v42  ;;  %2356 = vmatprep.mubr.f32.mxu1 %v3525_v35  ;;  %2435 = vmatpush3.msra.mxu1 %v3147_v25 }
 0x19c   : > { %v728_v45 = vsub.f32 %v3511_v61, %v4237_v5  ;;  %v3539_v11 = vsub.f32 %v597_v41, %v3500_v22  ;;  %2717 = vrcp.f32 %v530_v38  ;;  %v506_v14 = vsel %vm505_vm12, %v3425_v24, %v504_v57  ;;  %v2708_v28 = vpop.eup %2707  ;;  %2436 = vmatprep.subr.mxu1 %v3163_v37 }
 0x19d   : > { %2294 = vmatprep.mubr.f32.mxu0 %v719_v27  ;;  %v3545_v15 = vand.u32 4294901760, %v600_v47  ;;  %v557_v46 = vmul.f32 %v2700_v32, %v3091_v43  ;;  %v509_v41 = vsel %vm507_vm13, %v508_v63, %v506_v14  ;;  %v513_v20 = vsel %vm512_vm14, %v3429_v42, %v511_v36  ;;  %v2710_v27 = vpop.eup %2709  ;;  %2437 = vmatpush3.msra.mxu1 %v3163_v37 }
 0x19e   : > { %v729_v38 = vand.u32 4294901760, %v728_v45  ;;  %v737_v57 = vand.u32 4294901760, %v3539_v11  ;;  %v531_v5 = vadd.f32 1e-06, %v509_v41  ;;  %v516_v43 = vsel %vm514_vm15, %v515_v55, %v513_v20  ;;  %v2712_v63 = vpop.eup %2711  ;;  %2438 = vmatprep.subr.mxu1 %v3186_v48 }
 0x19f   : > { %v579_v32 = vmul.f32 %v3440_v33, %v557_v46  ;;  %v3562_v24 = vsub.f32 %v598_v58, %v3507_v19  ;;  %v532_v14 = vadd.f32 1e-06, %v516_v43  ;;  %v558_v45 = vmul.f32 %v2706_v10, %v3093_v44  ;;  %2357 = vmatmul.mubr.f32.gmra.mxu1 %v3545_v15 }
 0x1a0   : > { %2295 = vmatmul.mubr.f32.vlgmr.msra.gmra.mxu0 %v729_v38  ;;  %v738_v36 = vsub.f32 %v3539_v11, %v737_v57  ;;  %v3570_v42 = vsub.f32 %v599_v21, %v3525_v35  ;;  %2719 = vrcp.f32 %v531_v5  ;;  %v559_v46 = vmul.f32 %v2708_v28, %v3099_v51  ;;  %2439 = vmatpush3.msra.mxu1 %v3186_v48 }
 0x1a1   : > { %2375 = vmatpush3.msra.mxu0 %v3119_v6  ;;  %v601_v58 = vadd.f32 %v3455_v0, %v579_v32  ;;  %v747_v55 = vand.u32 4294901760, %v3562_v24  ;;  %2721 = vrcp.f32 %v532_v14  ;;  %v580_v44 = vmul.f32 %v3440_v33, %v558_v45  ;;  %2440 = vmatprep.subr.mxu1 %v3191_v54 }
 0x1a2   : > { %v739_v41 = vand.u32 4294901760, %v738_v36  ;;  %2376 = vmatprep.subr.mxu0 %v3136_v18  ;;  %v757_v21 = vand.u32 4294901760, %v3570_v42  ;;  %v581_v6 = vmul.f32 %v3440_v33, %v559_v46  ;;  %v3590_v10 = vsub.f32 %v600_v47, %v3545_v15  ;;  %2441 = vmatpush3.msra.mxu1 %v3191_v54 }
 0x1a3   : > { %v3581_v5 = vand.u32 4294901760, %v601_v58  ;;  %2377 = vmatpush3.msra.mxu0 %v3136_v18  ;;  %v748_v51 = vsub.f32 %v3562_v24, %v747_v55  ;;  %v602_v28 = vadd.f32 %v3455_v0, %v580_v44  ;;  %v560_v18 = vmul.f32 %v2710_v27, %v3101_v52  ;;  %2442 = vmatprep.subr.mxu1 %v3208_v62 }
 0x1a4   : > { %2297 = vmatprep.mubr.f32.mxu0 %v739_v41  ;;  %v758_v20 = vsub.f32 %v3570_v42, %v757_v21  ;;  %2378 = vmatprep.subr.mxu0 %v3161_v34  ;;  %v603_v43 = vadd.f32 %v3455_v0, %v581_v6  ;;  %v767_v47 = vand.u32 4294901760, %v3590_v10  ;;  %v561_v45 = vmul.f32 %v2712_v63, %v3107_v59 }
 0x1a5   : > { %2359 = vmatprep.mubr.f32.mxu1 %v3581_v5  ;;  %v749_v38 = vand.u32 4294901760, %v748_v51  ;;  %v3603_v32 = vsub.f32 %v601_v58, %v3581_v5  ;;  %v3606_v36 = vand.u32 4294901760, %v602_v28  ;;  %2379 = vmatpush3.msra.mxu0 %v3161_v34  ;;  %v582_v27 = vmul.f32 %v3440_v33, %v560_v18 }
 0x1a6   : > { %v2714_v14 = vpop.eup %2713  ;;  %v759_v52 = vand.u32 4294901760, %v758_v20  ;;  %v3612_v41 = vand.u32 4294901760, %v603_v43  ;;  %v768_v58 = vsub.f32 %v3590_v10, %v767_v47  ;;  %v583_v59 = vmul.f32 %v3440_v33, %v561_v45  ;;  %2380 = vmatprep.subr.mxu0 %v3173_v39  ;;  %2443 = vmatpush3.msra.mxu1 %v3208_v62 }
 0x1a7   : > { %v2716_v46 = vpop.eup %2715  ;;  %2298 = vmatmul.mubr.f32.gmra.mxu0 %v749_v38  ;;  %v4240_v44 = vand.u32 4294901760, %v3603_v32  ;;  %v562_v51 = vmul.f32 %v2714_v14, %v3110_v60  ;;  %2360 = vmatmul.mubr.f32.gmra.mxu1 %v3606_v36  ;;  %v604_v34 = vadd.f32 %v3455_v0, %v582_v27  ;;  %v3623_v63 = vsub.f32 %v602_v28, %v3606_v36 }
 0x1a8   : > { %2300 = vmatprep.mubr.f32.mxu0 %v759_v52  ;;  %2362 = vmatprep.mubr.f32.mxu1 %v3612_v41  ;;  %v769_v6 = vand.u32 4294901760, %v768_v58  ;;  %v3632_v18 = vsub.f32 %v603_v43, %v3612_v41  ;;  %v605_v14 = vadd.f32 %v3455_v0, %v583_v59  ;;  %v563_v27 = vmul.f32 %v2716_v46, %v3125_v8 }
 0x1a9   : > { %v778_v20 = vsub.f32 %v3603_v32, %v4240_v44  ;;  %v584_v60 = vmul.f32 %v3440_v33, %v562_v51  ;;  %v2718_v38 = vpop.eup %2717  ;;  %2381 = vmatpush3.msra.mxu0 %v3173_v39  ;;  %v3636_v28 = vand.u32 4294901760, %v604_v34  ;;  %v4238_v52 = vand.u32 4294901760, %v3623_v63  ;;  %2444 = vmatprep.subr.mxu1 %v3215_v4 }
 0x1aa   : > { %2382 = vmatprep.subr.mxu0 %v3189_v53  ;;  %v4239_v58 = vand.u32 4294901760, %v3632_v18  ;;  %v564_v51 = vmul.f32 %v2718_v38, %v3128_v9  ;;  %2445 = vmatpush3.msra.mxu1 %v3215_v4  ;;  %v3647_v39 = vand.u32 4294901760, %v605_v14  ;;  %v585_v46 = vmul.f32 %v3440_v33, %v563_v27 }
 0x1ab   : > { %v779_v45 = vand.u32 4294901760, %v778_v20  ;;  %v606_v43 = vadd.f32 %v3455_v0, %v584_v60  ;;  %2301 = vmatmul.mubr.f32.gmra.mxu0 %v769_v6  ;;  %v788_v8 = vsub.f32 %v3623_v63, %v4238_v52  ;;  %v3654_v59 = vsub.f32 %v604_v34, %v3636_v28  ;;  %2363 = vmatmul.mubr.f32.gmra.mxu1 %v3636_v28 }
 0x1ac   : > { %2383 = vmatpush3.msra.mxu0 %v3189_v53  ;;  %v798_v9 = vsub.f32 %v3632_v18, %v4239_v58  ;;  %v586_v6 = vmul.f32 %v3440_v33, %v564_v51  ;;  %2446 = vmatprep.subr.mxu1 %v3225_v12  ;;  %v607_v34 = vadd.f32 %v3455_v0, %v585_v46 }
 0x1ad   : > { %v3658_v20 = vand.u32 4294901760, %v606_v43  ;;  %v2720_v60 = vpop.eup %2719  ;;  %2303 = vmatprep.mubr.f32.mxu0 %v779_v45  ;;  %v789_v38 = vand.u32 4294901760, %v788_v8  ;;  %v4242_v27 = vand.u32 4294901760, %v3654_v59  ;;  %v3668_v52 = vsub.f32 %v605_v14, %v3647_v39  ;;  %2365 = vmatprep.mubr.f32.mxu1 %v3647_v39 }
 0x1ae   : > { %v2722_v53 = vpop.eup %2721  ;;  %2384 = vmatprep.subr.mxu0 %v3199_v56  ;;  %v799_v58 = vand.u32 4294901760, %v798_v9  ;;  %v608_v51 = vadd.f32 %v3455_v0, %v586_v6  ;;  %v565_v44 = vmul.f32 %v2720_v60, %v3151_v26  ;;  %2447 = vmatpush3.msra.mxu1 %v3225_v12  ;;  %v3679_v8 = vand.u32 4294901760, %v607_v34 }
 0x1af   : > { %v3675_v45 = vsub.f32 %v606_v43, %v3658_v20  ;;  %2385 = vmatpush3.msra.mxu0 %v3199_v56  ;;  %v808_v14 = vsub.f32 %v3654_v59, %v4242_v27  ;;  %v4241_v46 = vand.u32 4294901760, %v3668_v52  ;;  %v566_v9 = vmul.f32 %v2722_v53, %v3154_v29  ;;  %2448 = vmatprep.subr.mxu1 %v3237_v30 }
 0x1b0   : > { %2386 = vmatprep.subr.mxu0 %v3213_v3  ;;  %v3688_v26 = vand.u32 4294901760, %v608_v51  ;;  %v587_v43 = vmul.f32 %v3440_v33, %v565_v44  ;;  %2449 = vmatpush3.msra.mxu1 %v3237_v30  ;;  %v3698_v29 = vsub.f32 %v607_v34, %v3679_v8 }
 0x1b1   : > { %2304 = vmatmul.mubr.f32.gmra.mxu0 %v789_v38  ;;  %v818_v56 = vsub.f32 %v3668_v52, %v4241_v46  ;;  %v827_v6 = vand.u32 4294901760, %v3675_v45  ;;  %v588_v60 = vmul.f32 %v3440_v33, %v566_v9  ;;  %2366 = vmatmul.mubr.f32.gmra.mxu1 %v3658_v20  ;;  %v809_v38 = vand.u32 4294901760, %v808_v14 }
 0x1b2   : > { %2387 = vmatpush3.msra.mxu0 %v3213_v3  ;;  %v609_v44 = vadd.f32 %v3455_v0, %v587_v43  ;;  %2450 = vmatprep.subr.mxu1 %v3250_v40  ;;  %v837_v46 = vand.u32 4294901760, %v3698_v29  ;;  %v3707_v27 = vsub.f32 %v608_v51, %v3688_v26 }
 0x1b3   : > { %2306 = vmatprep.mubr.f32.mxu0 %v799_v58  ;;  %v610_v53 = vadd.f32 %v3455_v0, %v588_v60  ;;  %2368 = vmatprep.mubr.f32.mxu1 %v3679_v8  ;;  %v819_v3 = vand.u32 4294901760, %v818_v56  ;;  %v828_v0 = vsub.f32 %v3675_v45, %v827_v6  ;;  %v4283_v56 = vld [vmem:[#allocation20_spill] sm:$0xff] }
 0x1b4   : > { %2388 = vmatprep.subr.mxu0 %v3223_v16  ;;  %v3711_v33 = vand.u32 4294901760, %v609_v44  ;;  %2451 = vmatpush3.msra.mxu1 %v3250_v40  ;;  %v4244_v51 = vand.u32 4294901760, %v3707_v27 }
 0x1b5   : > { %2389 = vmatpush3.msra.mxu0 %v3223_v16  ;;  %v3718_v58 = vand.u32 4294901760, %v610_v53  ;;  %2452 = vmatprep.subr.mxu1 %v3258_v49  ;;  %v838_v16 = vsub.f32 %v3698_v29, %v837_v46  ;;  %v829_v14 = vand.u32 4294901760, %v828_v0  ;;  %v4286_v0 = vld [vmem:[#allocation30_spill] sm:$0xff] }
 0x1b6   : > { %2390 = vmatprep.subr.mxu0 %v3235_v23  ;;  %v3723_v34 = vsub.f32 %v609_v44, %v3711_v33  ;;  %2453 = vmatpush3.msra.mxu1 %v3258_v49  ;;  %v4284_v44 = vld [vmem:[#allocation27_spill] sm:$0xff] }
 0x1b7   : > { %2307 = vmatmul.mubr.f32.gmra.mxu0 %v809_v38  ;;  %2369 = vmatmul.mubr.f32.gmra.mxu1 %v3688_v26  ;;  %v3735_v43 = vsub.f32 %v610_v53, %v3718_v58  ;;  %v839_v60 = vand.u32 4294901760, %v838_v16  ;;  %v4285_v38 = vld [vmem:[#allocation22_spill] sm:$0xff] }
 0x1b8   : > { %2391 = vmatpush3.msra.mxu0 %v3235_v23  ;;  %2454 = vmatprep.subr.mxu1 %v3269_v2  ;;  %v4243_v9 = vand.u32 4294901760, %v3723_v34  ;;  %v848_v23 = vsub.f32 %v3707_v27, %v4244_v51  ;;  %v4288_v51 = vld [vmem:[#allocation33_spill] sm:$0xff] }
 0x1b9   : > { %2309 = vmatprep.mubr.f32.mxu0 %v819_v3  ;;  %2371 = vmatprep.mubr.f32.mxu1 %v3711_v33  ;;  %v867_v3 = vand.u32 4294901760, %v3735_v43 }
 0x1ba   : > { %2392 = vmatprep.subr.mxu0 %v4283_v56  ;;  %2455 = vmatpush3.msra.mxu1 %v3269_v2  ;;  %v858_v53 = vsub.f32 %v3723_v34, %v4243_v9  ;;  %v849_v16 = vand.u32 4294901760, %v848_v23  ;;  %v4291_v23 = vld [vmem:[#allocation29_spill] sm:$0xff] }
 0x1bb   : > { %2393 = vmatpush3.msra.mxu0 %v4283_v56  ;;  %2456 = vmatprep.subr.mxu1 %v4284_v44  ;;  %v4287_v56 = vld [vmem:[#allocation23_spill] sm:$0xff]  ;;  %v868_v9 = vsub.f32 %v3735_v43, %v867_v3 }
 0x1bc   : > { %2394 = vmatprep.subr.mxu0 %v4285_v38  ;;  %2457 = vmatpush3.msra.mxu1 %v4284_v44 }
 0x1bd   : > { %2310 = vmatmul.mubr.f32.gmra.mxu0 %v829_v14  ;;  %2372 = vmatmul.mubr.f32.gmra.mxu1 %v3718_v58  ;;  %v859_v14 = vand.u32 4294901760, %v858_v53  ;;  %v4292_v53 = vld [vmem:[#allocation32_spill] sm:$0xff] }
 0x1be   : > { %2395 = vmatpush3.msra.mxu0 %v4285_v38  ;;  %2458 = vmatprep.subr.mxu1 %v4286_v0  ;;  %v4289_v38 = vld [vmem:[#allocation26_spill] sm:$0xff] }
 0x1bf   : > { %2312 = vmatprep.mubr.f32.mxu0 %v839_v60  ;;  %2396 = vmatprep.subr.mxu0 %v4287_v56  ;;  %v4290_v60 = vand.u32 4294901760, %v3511_v61 }
 0x1c0   : > { %2459 = vmatpush3.msra.mxu1 %v4286_v0  ;;  %2462 = vmatprep.mubr.f32.mxu1 %v717_v50  ;;  %v869_v50 = vand.u32 4294901760, %v868_v9  ;;  %v4293_v9 = vld [vmem:[#allocation35_spill] sm:$0xff] }
 0x1c1   : > { %2397 = vmatpush3.msra.mxu0 %v4287_v56  ;;  %2460 = vmatprep.subr.mxu1 %v4288_v51 }
 0x1c2   : > { %2398 = vmatprep.subr.mxu0 %v4289_v38  ;;  %2461 = vmatpush3.msra.mxu1 %v4288_v51 }
 0x1c3   : > { %2313 = vmatmul.mubr.f32.gmra.mxu0 %v849_v16  ;;  %2463 = vmatmul.mubr.f32.vlgmr.msra.gmra.mxu1 %v4290_v60 }
 0x1c4   : > { %2399 = vmatpush3.msra.mxu0 %v4289_v38  ;;  %2542 = vmatprep.subr.mxu1 %v3114_v1 }
 0x1c5   : > { %2315 = vmatprep.mubr.f32.mxu0 %v859_v14  ;;  %2400 = vmatprep.subr.mxu0 %v4291_v23 }
 0x1c6   : > { %2465 = vmatprep.mubr.f32.mxu1 %v737_v57  ;;  %2543 = vmatpush3.msra.mxu1 %v3114_v1  ;;  %v4294_v1 = vld [vmem:[#allocation11_spill] sm:$0xff]  ;;  %v4304_v57 = vld [vmem:[#allocation16_spill] sm:$0xff] }
 0x1c7   : > { %2401 = vmatpush3.msra.mxu0 %v4291_v23  ;;  %2544 = vmatprep.subr.mxu1 %v3121_v7 }
 0x1c8   : > { %2402 = vmatprep.subr.mxu0 %v4292_v53  ;;  %2545 = vmatpush3.msra.mxu1 %v3121_v7  ;;  %v4295_v7 = vand.u32 4294901760, %v3603_v32 }
 0x1c9   : > { %2316 = vmatmul.mubr.f32.gmra.mxu0 %v869_v50  ;;  %2466 = vmatmul.mubr.f32.gmra.mxu1 %v747_v55  ;;  %v4313_v55 = vld [vmem:[#allocation28_spill] sm:$0xff] }
 0x1ca   : > { %2403 = vmatpush3.msra.mxu0 %v4292_v53  ;;  %2546 = vmatprep.subr.mxu1 %v3147_v25 }
 0x1cb   : > { %2404 = vmatprep.subr.mxu0 %v4293_v9  ;;  %2406 = vmatprep.mubr.f32.mxu0 %v3488_v31  ;;  %v4298_v31 = vand.u32 4294901760, %v3623_v63 }
 0x1cc   : > { %2468 = vmatprep.mubr.f32.mxu1 %v757_v21  ;;  %2547 = vmatpush3.msra.mxu1 %v3147_v25  ;;  %v4296_v25 = vld [vmem:[#allocation12_spill] sm:$0xff]  ;;  %v4314_v21 = vld [vmem:[#allocation31_spill] sm:$0xff] }
 0x1cd   : > { %2405 = vmatpush3.msra.mxu0 %v4293_v9  ;;  %2548 = vmatprep.subr.mxu1 %v3163_v37 }
 0x1ce   : > { %2486 = vmatprep.subr.mxu0 %v4294_v1  ;;  %2549 = vmatpush3.msra.mxu1 %v3163_v37  ;;  %v4297_v37 = vld [vmem:[#allocation13_spill] sm:$0xff] }
 0x1cf   : > { %2407 = vmatmul.mubr.f32.vlgmr.msra.gmra.mxu0 %v3511_v61  ;;  %2469 = vmatmul.mubr.f32.gmra.mxu1 %v767_v47  ;;  %v4300_v61 = vld [vmem:[#allocation14_spill] sm:$0xff]  ;;  %v4316_v47 = vld [vmem:[#allocation36_spill] sm:$0xff] }
 0x1d0   : > { %2487 = vmatpush3.msra.mxu0 %v4294_v1  ;;  %2550 = vmatprep.subr.mxu1 %v3186_v48 }
 0x1d1   : > { %2409 = vmatprep.mubr.f32.mxu0 %v3539_v11  ;;  %2471 = vmatprep.mubr.f32.mxu1 %v4295_v7  ;;  %v4302_v11 = vand.u32 4294901760, %v3654_v59 }
 0x1d2   : > { %2488 = vmatprep.subr.mxu0 %v4296_v25  ;;  %2551 = vmatpush3.msra.mxu1 %v3186_v48  ;;  %v4299_v48 = vand.u32 4294901760, %v3632_v18 }
 0x1d3   : > { %2489 = vmatpush3.msra.mxu0 %v4296_v25  ;;  %2552 = vmatprep.subr.mxu1 %v3191_v54 }
 0x1d4   : > { %2490 = vmatprep.subr.mxu0 %v4297_v37  ;;  %2553 = vmatpush3.msra.mxu1 %v3191_v54  ;;  %v4301_v54 = vld [vmem:[#allocation15_spill] sm:$0xff] }
 0x1d5   : > { %2410 = vmatmul.mubr.f32.gmra.mxu0 %v3562_v24  ;;  %2472 = vmatmul.mubr.f32.gmra.mxu1 %v4298_v31  ;;  %v4308_v24 = vand.u32 4294901760, %v3707_v27 }
 0x1d6   : > { %2491 = vmatpush3.msra.mxu0 %v4297_v37  ;;  %2554 = vmatprep.subr.mxu1 %v3208_v62 }
 0x1d7   : > { %2412 = vmatprep.mubr.f32.mxu0 %v3570_v42  ;;  %2474 = vmatprep.mubr.f32.mxu1 %v4299_v48  ;;  %v4310_v42 = vld [vmem:[#allocation21_spill] sm:$0xff] }
 0x1d8   : > { %2492 = vmatprep.subr.mxu0 %v4300_v61  ;;  %2555 = vmatpush3.msra.mxu1 %v3208_v62  ;;  %v4303_v62 = vand.u32 4294901760, %v3668_v52 }
 0x1d9   : > { %2493 = vmatpush3.msra.mxu0 %v4300_v61  ;;  %2556 = vmatprep.subr.mxu1 %v3215_v4 }
 0x1da   : > { %2494 = vmatprep.subr.mxu0 %v4301_v54  ;;  %2557 = vmatpush3.msra.mxu1 %v3215_v4  ;;  %v4305_v4 = vld [vmem:[#allocation17_spill] sm:$0xff] }
 0x1db   : > { %2413 = vmatmul.mubr.f32.gmra.mxu0 %v3590_v10  ;;  %2475 = vmatmul.mubr.f32.gmra.mxu1 %v4302_v11  ;;  %v4315_v10 = vld [vmem:[#allocation34_spill] sm:$0xff] }
 0x1dc   : > { %2495 = vmatpush3.msra.mxu0 %v4301_v54  ;;  %2558 = vmatprep.subr.mxu1 %v3225_v12 }
 0x1dd   : > { %2415 = vmatprep.mubr.f32.mxu0 %v3603_v32  ;;  %2477 = vmatprep.mubr.f32.mxu1 %v4303_v62 }
 0x1de   : > { %2496 = vmatprep.subr.mxu0 %v4304_v57  ;;  %2559 = vmatpush3.msra.mxu1 %v3225_v12  ;;  %v4306_v12 = vld [vmem:[#allocation18_spill] sm:$0xff] }
 0x1df   : > { %2497 = vmatpush3.msra.mxu0 %v4304_v57  ;;  %2560 = vmatprep.subr.mxu1 %v3237_v30 }
 0x1e0   : > { %2498 = vmatprep.subr.mxu0 %v4305_v4  ;;  %2561 = vmatpush3.msra.mxu1 %v3237_v30  ;;  %v4307_v30 = vld [vmem:[#allocation19_spill] sm:$0xff] }
 0x1e1   : > { %2416 = vmatmul.mubr.f32.gmra.mxu0 %v3623_v63  ;;  %2478 = vmatmul.mubr.f32.gmra.mxu1 %v827_v6 }
 0x1e2   : > { %2499 = vmatpush3.msra.mxu0 %v4305_v4  ;;  %2562 = vmatprep.subr.mxu1 %v3250_v40 }
 0x1e3   : > { %2418 = vmatprep.mubr.f32.mxu0 %v3632_v18  ;;  %2480 = vmatprep.mubr.f32.mxu1 %v837_v46 }
 0x1e4   : > { %2500 = vmatprep.subr.mxu0 %v4306_v12  ;;  %2563 = vmatpush3.msra.mxu1 %v3250_v40  ;;  %v4309_v40 = vand.u32 4294901760, %v3723_v34 }
 0x1e5   : > { %2501 = vmatpush3.msra.mxu0 %v4306_v12  ;;  %2564 = vmatprep.subr.mxu1 %v3258_v49 }
 0x1e6   : > { %2502 = vmatprep.subr.mxu0 %v4307_v30  ;;  %2565 = vmatpush3.msra.mxu1 %v3258_v49  ;;  %v4311_v49 = vld [vmem:[#allocation24_spill] sm:$0xff] }
 0x1e7   : > { %2419 = vmatmul.mubr.f32.gmra.mxu0 %v3654_v59  ;;  %2481 = vmatmul.mubr.f32.gmra.mxu1 %v4308_v24 }
 0x1e8   : > { %2503 = vmatpush3.msra.mxu0 %v4307_v30  ;;  %2566 = vmatprep.subr.mxu1 %v3269_v2 }
 0x1e9   : > { %2421 = vmatprep.mubr.f32.mxu0 %v3668_v52  ;;  %2483 = vmatprep.mubr.f32.mxu1 %v4309_v40  ;;  %v4003_v40 = vld [vmem:[%s4178_s4] ss:$0 sm:$0xff] }
 0x1ea   : > { %2504 = vmatprep.subr.mxu0 %v4310_v42  ;;  %2567 = vmatpush3.msra.mxu1 %v3269_v2  ;;  %v4312_v2 = vld [vmem:[#allocation25_spill] sm:$0xff] }
 0x1eb   : > { %2505 = vmatpush3.msra.mxu0 %v4310_v42  ;;  %2568 = vmatprep.subr.mxu1 %v4284_v44 }
 0x1ec   : > { %2506 = vmatprep.subr.mxu0 %v4311_v49  ;;  %2569 = vmatpush3.msra.mxu1 %v4284_v44 }
 0x1ed   : > { %2422 = vmatmul.mubr.f32.gmra.mxu0 %v3675_v45  ;;  %2484 = vmatmul.mubr.f32.gmra.mxu1 %v867_v3 }
 0x1ee   : > { %2507 = vmatpush3.msra.mxu0 %v4311_v49  ;;  %2570 = vmatprep.subr.mxu1 %v4286_v0 }
 0x1ef   : > { %2424 = vmatprep.mubr.f32.mxu0 %v3698_v29  ;;  %2508 = vmatprep.subr.mxu0 %v4312_v2 }
 0x1f0   : > { %2571 = vmatpush3.msra.mxu1 %v4286_v0  ;;  %2574 = vmatprep.mubr.f32.mxu1 %v3473_v13 }
 0x1f1   : > { %2509 = vmatpush3.msra.mxu0 %v4312_v2  ;;  %2572 = vmatprep.subr.mxu1 %v4288_v51 }
 0x1f2   : > { %2510 = vmatprep.subr.mxu0 %v4313_v55  ;;  %2573 = vmatpush3.msra.mxu1 %v4288_v51 }
 0x1f3   : > { %2425 = vmatmul.mubr.f32.gmra.mxu0 %v3707_v27  ;;  %2575 = vmatmul.mubr.f32.vlgmr.msra.gmra.mxu1 %v3498_v17 }
 0x1f4   : > { %2511 = vmatpush3.msra.mxu0 %v4313_v55  ;;  %2427 = vmatprep.mubr.f32.mxu0 %v3723_v34 }
 0x1f5   : > { %2512 = vmatprep.subr.mxu0 %v4314_v21  ;;  %2577 = vmatprep.mubr.f32.mxu1 %v3500_v22 }
 0x1f6   : > { %2513 = vmatpush3.msra.mxu0 %v4314_v21 }
 0x1f7   : > { %2514 = vmatprep.subr.mxu0 %v4315_v10  ;;  %2428 = vmatmul.mubr.f32.gmra.mxu0 %v3735_v43 }
 0x1f8   : > { %2515 = vmatpush3.msra.mxu0 %v4315_v10  ;;  %2578 = vmatmul.mubr.f32.gmra.mxu1 %v3507_v19 }
 0x1f9   : > { %2516 = vmatprep.subr.mxu0 %v4316_v47  ;;  %2518 = vmatprep.mubr.f32.mxu0 %v3473_v13 }
 0x1fa   : > { %2580 = vmatprep.mubr.f32.mxu1 %v3525_v35  ;;  %2517 = vmatpush3.msra.mxu0 %v4316_v47 }
 0x1fb   : > { %2519 = vmatmul.mubr.f32.vlgmr.msra.gmra.mxu0 %v3498_v17 }
 0x1fc   : > { %2581 = vmatmul.mubr.f32.gmra.mxu1 %v3545_v15  ;;  %2521 = vmatprep.mubr.f32.mxu0 %v3500_v22 }
 0x1fd   : > { %2583 = vmatprep.mubr.f32.mxu1 %v3581_v5 }
 0x1ff   : > { %2522 = vmatmul.mubr.f32.gmra.mxu0 %v3507_v19 }
 0x200   : > { %2584 = vmatmul.mubr.f32.gmra.mxu1 %v3606_v36  ;;  %2524 = vmatprep.mubr.f32.mxu0 %v3525_v35 }
 0x201   : > { %2586 = vmatprep.mubr.f32.mxu1 %v3612_v41 }
 0x203   : > { %2525 = vmatmul.mubr.f32.gmra.mxu0 %v3545_v15 }
 0x204   : > { %2587 = vmatmul.mubr.f32.gmra.mxu1 %v3636_v28  ;;  %2527 = vmatprep.mubr.f32.mxu0 %v3581_v5 }
 0x205   : > { %2589 = vmatprep.mubr.f32.mxu1 %v3647_v39 }
 0x207   : > { %2528 = vmatmul.mubr.f32.gmra.mxu0 %v3606_v36 }
 0x208   : > { %2590 = vmatmul.mubr.f32.gmra.mxu1 %v3658_v20  ;;  %2530 = vmatprep.mubr.f32.mxu0 %v3612_v41 }
 0x209   : > { %2592 = vmatprep.mubr.f32.mxu1 %v3679_v8 }
 0x20b   : > { %2531 = vmatmul.mubr.f32.gmra.mxu0 %v3636_v28 }
 0x20c   : > { %2593 = vmatmul.mubr.f32.gmra.mxu1 %v3688_v26  ;;  %2533 = vmatprep.mubr.f32.mxu0 %v3647_v39 }
 0x20d   : > { %2595 = vmatprep.mubr.f32.mxu1 %v3711_v33 }
 0x20f   : > { %2534 = vmatmul.mubr.f32.gmra.mxu0 %v3658_v20 }
 0x210   : > { %2596 = vmatmul.mubr.f32.gmra.mxu1 %v3718_v58  ;;  %2536 = vmatprep.mubr.f32.mxu0 %v3679_v8 }
 0x213   : > { %2537 = vmatmul.mubr.f32.gmra.mxu0 %v3688_v26 }
 0x214   : > { %2539 = vmatprep.mubr.f32.mxu0 %v3711_v33 }
 0x217   : > { %2540 = vmatmul.mubr.f32.gmra.mxu0 %v3718_v58 }
 0x256   : > { %v3914_v13 = vpop.f32.mrf.mxu1 }
 0x258   : > { %v3916_v17 = vpop.f32.mrf.mxu1 }
 0x25a   : > { %v3918_v22 = vpop.f32.mrf.mxu1 }
 0x25c   : > { %v3920_v19 = vpop.f32.mrf.mxu1 }
 0x25f   : > { %v3922_v15 = vpop.f32.mrf.mxu1 }
 0x260   : > { %v2296_v35 = vpop.f32.mrf.mxu0 }
 0x261   : > { %v3924_v32 = vpop.f32.mrf.mxu1  ;;  %v732_v55 = vadd.f32 %v2296_v35, %v4003_v40 }
 0x262   : > { %v721_v5 = vpop.f32.mrf.mxu0 }
 0x263   : > { %v722_v10 = vadd.f32 %v4003_v40, %v721_v5 }
 0x267   : > { %v2299_v36 = vpop.f32.mrf.mxu0  ;;  %v3926_v41 = vpop.f32.mrf.mxu1 }
 0x269   : > { %v741_v63 = vpop.f32.mrf.mxu0  ;;  %v3928_v18 = vpop.f32.mrf.mxu1 }
 0x26b   : > { %v2302_v28 = vpop.f32.mrf.mxu0  ;;  %v3930_v52 = vpop.f32.mrf.mxu1 }
 0x26c   : > { %v772_v35 = vadd.f32 %v2302_v28, %v4003_v40 }
 0x26d   : > { %v3932_v39 = vpop.f32.mrf.mxu0  ;;  %v3934_v59 = vpop.f32.mrf.mxu1 }
 0x26e   : > { %v1053_v28 = vadd.f32 %v3922_v15, %v772_v35  ;;  %v2723_v35 = vld [vmem:[%s3028_s7 + $0x8] sm:$0xff] }
 0x271   : > { %v3936_v20 = vpop.f32.mrf.mxu0  ;;  %v3938_v27 = vpop.f32.mrf.mxu1 }
 0x273   : > { %v3940_v45 = vpop.f32.mrf.mxu0  ;;  %v3942_v8 = vpop.f32.mrf.mxu1 }
 0x277   : > { %v3944_v46 = vpop.f32.mrf.mxu0  ;;  %v3946_v26 = vpop.f32.mrf.mxu1 }
 0x278   : > { %v812_v15 = vadd.f32 %v3944_v46, %v4003_v40 }
 0x279   : > { %v3948_v6 = vpop.f32.mrf.mxu0  ;;  %v3950_v29 = vpop.f32.mrf.mxu1 }
 0x27a   : > { %4317 = vst [vmem:[#allocation20_spill] sm:$0xff] %v3950_v29 }
 0x27d   : > { %v3952_v33 = vpop.f32.mrf.mxu0  ;;  %v3954_v58 = vpop.f32.mrf.mxu1 }
 0x27e   : > { %4318 = vst [vmem:[#allocation27_spill] sm:$0xff] %v3954_v58  ;;  %v742_v58 = vadd.f32 %v4003_v40, %v741_v63 }
 0x27f   : > { %v3956_v34 = vpop.f32.mrf.mxu0  ;;  %v3958_v51 = vpop.f32.mrf.mxu1 }
 0x280   : > { %4319 = vst [vmem:[#allocation22_spill] sm:$0xff] %v3958_v51  ;;  %v1035_v63 = vadd.f32 %v3920_v19, %v742_v58 }
 0x283   : > { %v3960_v43 = vpop.f32.mrf.mxu0  ;;  %v2464_v44 = vpop.f32.mrf.mxu1 }
 0x285   : > { %v3962_v3 = vpop.f32.mrf.mxu0  ;;  %v1410_v0 = vpop.f32.mrf.mxu1 }
 0x289   : > { %v3964_v16 = vpop.f32.mrf.mxu0  ;;  %v3966_v56 = vpop.f32.mrf.mxu1 }
 0x28b   : > { %v3968_v14 = vpop.f32.mrf.mxu0  ;;  %v3970_v38 = vpop.f32.mrf.mxu1 }
 0x28c   : > { %4320 = vst [vmem:[#allocation30_spill] sm:$0xff] %v3968_v14 }
 0x28f   : > { %v2408_v60 = vpop.f32.mrf.mxu0  ;;  %v3972_v50 = vpop.f32.mrf.mxu1 }
 0x291   : > { %v1216_v23 = vpop.f32.mrf.mxu0  ;;  %v3974_v53 = vpop.f32.mrf.mxu1 }
 0x295   : > { %v2411_v9 = vpop.f32.mrf.mxu0  ;;  %v3976_v1 = vpop.f32.mrf.mxu1 }
 0x297   : > { %v1230_v7 = vpop.f32.mrf.mxu0  ;;  %v3978_v25 = vpop.f32.mrf.mxu1 }
 0x29b   : > { %v2414_v37 = vpop.f32.mrf.mxu0  ;;  %v3980_v31 = vpop.f32.mrf.mxu1 }
 0x29d   : > { %v1244_v48 = vpop.f32.mrf.mxu0  ;;  %v3982_v61 = vpop.f32.mrf.mxu1 }
 0x2a1   : > { %v3984_v54 = vpop.f32.mrf.mxu0  ;;  %v3986_v11 = vpop.f32.mrf.mxu1 }
 0x2a2   : > { %4321 = vst [vmem:[#allocation23_spill] sm:$0xff] %v3986_v11  ;;  %v1023_v11 = vadd.f32 %v3916_v17, %v722_v10  ;;  %v792_v17 = vadd.f32 %v3936_v20, %v4003_v40 }
 0x2a3   : > { %v3988_v62 = vpop.f32.mrf.mxu0  ;;  %v3990_v57 = vpop.f32.mrf.mxu1 }
 0x2a4   : > { %4322 = vst [vmem:[#allocation33_spill] sm:$0xff] %v3990_v57  ;;  %v1217_v5 = vadd.f32 %v1216_v23, %v1023_v11  ;;  %v1231_v23 = vadd.f32 %v1230_v7, %v1035_v63 }
 0x2a7   : > { %v3992_v4 = vpop.f32.mrf.mxu0  ;;  %v3994_v12 = vpop.f32.mrf.mxu1 }
 0x2a8   : > { %4323 = vst [vmem:[#allocation26_spill] sm:$0xff] %v3994_v12  ;;  %v1029_v12 = vadd.f32 %v3914_v13, %v732_v55  ;;  %v762_v13 = vadd.f32 %v4003_v40, %v3932_v39  ;;  %v782_v39 = vadd.f32 %v4003_v40, %v3940_v45 }
 0x2a9   : > { %v3996_v30 = vpop.f32.mrf.mxu0  ;;  %v3998_v24 = vpop.f32.mrf.mxu1 }
 0x2aa   : > { %4324 = vst [vmem:[#allocation29_spill] sm:$0xff] %v3998_v24  ;;  %v752_v24 = vadd.f32 %v2299_v36, %v4003_v40 }
 0x2ad   : > { %v4005_v42 = vpop.f32.mrf.mxu0  ;;  %v4007_v49 = vpop.f32.mrf.mxu1 }
 0x2ae   : > { %4325 = vst [vmem:[#allocation32_spill] sm:$0xff] %v4007_v49  ;;  %v1224_v49 = vadd.f32 %v2408_v60, %v1029_v12 }
 0x2af   : > { %v4009_v2 = vpop.f32.mrf.mxu0  ;;  %v4012_v21 = vpop.f32.mrf.mxu1 }
 0x2b0   : > { %4326 = vst [vmem:[#allocation35_spill] sm:$0xff] %v4012_v21  ;;  %v1419_v12 = vadd.f32 %v2464_v44, %v1224_v49 }
 0x2b3   : > { %v4015_v47 = vpop.f32.mrf.mxu0  ;;  %v2576_v51 = vpop.f32.mrf.mxu1 }
 0x2b4   : > { %4327 = vst [vmem:[#allocation11_spill] sm:$0xff] %v4015_v47  ;;  %v1041_v47 = vadd.f32 %v3918_v22, %v752_v24  ;;  %v1411_v24 = vadd.f32 %v1410_v0, %v1217_v5  ;;  %v1065_v0 = vadd.f32 %v3926_v41, %v792_v17  ;;  %v2724_v41 = vld [vmem:[%s3028_s7] sm:$0xff]  ;;  %v2725_v17 = vld [vmem:[%s3028_s7 + $0x18] sm:$0xff] }
 0x2b5   : > { %v4019_v57 = vpop.f32.mrf.mxu0  ;;  %v1826_v29 = vpop.f32.mrf.mxu1 }
 0x2b6   : > { %v1238_v55 = vadd.f32 %v2411_v9, %v1041_v47  ;;  %v1047_v9 = vadd.f32 %v3924_v32, %v762_v13  ;;  %v802_v13 = vadd.f32 %v4003_v40, %v3948_v6  ;;  %v1077_v6 = vadd.f32 %v3930_v52, %v812_v15 }
 0x2b7   : > { %v4024_v21 = vpop.f32.mrf.mxu0 }
 0x2b8   : > { %v2579_v14 = vpop.f32.mrf.mxu1  ;;  %v1435_v20 = vadd.f32 %v3966_v56, %v1238_v55  ;;  %v1245_v7 = vadd.f32 %v1244_v48, %v1047_v9  ;;  %v1059_v56 = vadd.f32 %v3928_v18, %v782_v39  ;;  %v1266_v48 = vadd.f32 %v3984_v54, %v1065_v0 }
 0x2b9   : > { %v4029_v36 = vpop.f32.mrf.mxu0  ;;  %v832_v18 = vadd.f32 %v3952_v33, %v4003_v40  ;;  %v1280_v33 = vadd.f32 %v3992_v4, %v1077_v6  ;;  %v1071_v52 = vadd.f32 %v3934_v59, %v802_v13  ;;  %v2727_v59 = vld [vmem:[%s3028_s7 + $0x28] sm:$0xff] }
 0x2ba   : > { %4328 = vst [vmem:[#allocation12_spill] sm:$0xff] %v4029_v36  ;;  %v1838_v60 = vpop.f32.mrf.mxu1  ;;  %v1252_v36 = vadd.f32 %v2414_v37, %v1053_v28  ;;  %v1443_v54 = vadd.f32 %v3974_v53, %v1245_v7  ;;  %v2726_v53 = vld [vmem:[%s3028_s7 + $0x10] sm:$0xff] }
 0x2bb   : > { %v2520_v10 = vpop.f32.mrf.mxu0  ;;  %v1089_v4 = vadd.f32 %v3938_v27, %v832_v18  ;;  %v4332_v18 = vld [vmem:[#allocation23_spill] sm:$0xff] }
 0x2bc   : > { %v1656_v22 = vadd.f32 %v2520_v10, %v1419_v12  ;;  %v2582_v11 = vpop.f32.mrf.mxu1  ;;  %v1451_v46 = vadd.f32 %v3972_v50, %v1252_v36  ;;  %v1259_v36 = vadd.f32 %v3988_v62, %v1059_v56 }
 0x2bd   : > { %v1649_v19 = vpop.f32.mrf.mxu0  ;;  %v1294_v27 = vadd.f32 %v4005_v42, %v1089_v4  ;;  %v2729_v42 = vld [vmem:[%s3028_s7 + $0x38] sm:$0xff]  ;;  %v4337_v4 = vld [vmem:[#allocation29_spill] sm:$0xff] }
 0x2be   : > { %v1833_v58 = vadd.f32 %v2576_v51, %v1656_v22  ;;  %v1650_v44 = vadd.f32 %v1649_v19, %v1411_v24  ;;  %v1850_v49 = vpop.f32.mrf.mxu1  ;;  %v1427_v51 = vadd.f32 %v3970_v38, %v1231_v23  ;;  %v822_v22 = vadd.f32 %v4003_v40, %v3956_v34 }
 0x2bf   : > { %v2523_v47 = vpop.f32.mrf.mxu0  ;;  %v1273_v34 = vadd.f32 %v3996_v30, %v1071_v52  ;;  %v1459_v0 = vadd.f32 %v3978_v25, %v1259_v36  ;;  %v872_v25 = vadd.f32 %v3964_v16, %v4003_v40  ;;  %v4330_v16 = vld [vmem:[#allocation11_spill] sm:$0xff]  ;;  %v1499_v6 = vadd.f32 %v4332_v18, %v1294_v27  ;;  %v4339_v27 = vld [vmem:[#allocation32_spill] sm:$0xff] }
 0x2c0   : > { %v1921_v45 = vadd.f32 %v2723_v35, %v1833_v58  ;;  %v1827_v37 = vadd.f32 %v1826_v29, %v1650_v44  ;;  %v1668_v5 = vadd.f32 %v2523_v47, %v1435_v20  ;;  %v2585_v32 = vpop.f32.mrf.mxu1  ;;  %v852_v58 = vadd.f32 %v3960_v43, %v4003_v40  ;;  %v2728_v35 = vld [vmem:[%s3028_s7 + $0x20] sm:$0xff] }
 0x2c1   : > { %v1661_v55 = vpop.f32.mrf.mxu0  ;;  %v1083_v43 = vadd.f32 %v3942_v8, %v822_v22  ;;  %v1483_v47 = vadd.f32 %v3980_v31, %v1280_v33  ;;  %v4334_v22 = vld [vmem:[#allocation33_spill] sm:$0xff]  ;;  %v4335_v33 = vld [vmem:[#allocation22_spill] sm:$0xff] }
 0x2c2   : > { %1937 = vst [vmem:[%s4051_s23 + $0x8] sm:$0xff] %v1921_v45  ;;  %v1920_v29 = vadd.f32 %v2724_v41, %v1827_v37  ;;  %v1845_v38 = vadd.f32 %v2579_v14, %v1668_v5  ;;  %v1662_v63 = vadd.f32 %v1661_v55, %v1427_v51  ;;  %v1862_v12 = vpop.f32.mrf.mxu1  ;;  %v1475_v51 = vadd.f32 %v3982_v61, %v1273_v34  ;;  %v4329_v55 = vld [vmem:[#allocation30_spill] sm:$0xff]  ;;  %v4331_v41 = vld [vmem:[#allocation20_spill] sm:$0xff] }
 0x2c3   : > { %v2526_v50 = vpop.f32.mrf.mxu0  ;;  %v1287_v31 = vadd.f32 %v4009_v2, %v1083_v43  ;;  %v2734_v43 = vld [vmem:[%s3028_s7 + $0x50] sm:$0xff] }
 0x2c4   : > { %1936 = vst [vmem:[%s4051_s23] sm:$0xff] %v1920_v29  ;;  %v1923_v28 = vadd.f32 %v2725_v17, %v1845_v38  ;;  %v1839_v10 = vadd.f32 %v1838_v60, %v1662_v63  ;;  %v1680_v23 = vadd.f32 %v2526_v50, %v1451_v46  ;;  %v2588_v14 = vpop.f32.mrf.mxu1  ;;  %v1467_v60 = vadd.f32 %v3976_v1, %v1266_v48  ;;  %v2730_v38 = vld [vmem:[%s3028_s7 + $0x30] sm:$0xff]  ;;  %v4333_v50 = vld [vmem:[#allocation27_spill] sm:$0xff]  ;;  %v2731_v17 = vld [vmem:[%s3028_s7 + $0x48] sm:$0xff] }
 0x2c5   : > { %v1673_v24 = vpop.f32.mrf.mxu0  ;;  %v842_v1 = vadd.f32 %v4003_v40, %v3962_v3  ;;  %v1101_v3 = vadd.f32 %v3946_v26, %v852_v58  ;;  %v862_v46 = vadd.f32 %v4003_v40, %v4329_v55 }
 0x2c6   : > { %1939 = vst [vmem:[%s4051_s23 + $0x18] sm:$0xff] %v1923_v28  ;;  %v1922_v39 = vadd.f32 %v2726_v53, %v1839_v10  ;;  %v1857_v62 = vadd.f32 %v2582_v11, %v1680_v23  ;;  %v1674_v9 = vadd.f32 %v1673_v24, %v1443_v54  ;;  %v1874_v19 = vpop.f32.mrf.mxu1  ;;  %v1113_v54 = vadd.f32 %v4333_v50, %v872_v25  ;;  %v4336_v53 = vld [vmem:[#allocation26_spill] sm:$0xff] }
 0x2c7   : > { %v2529_v44 = vpop.f32.mrf.mxu0  ;;  %v1308_v48 = vadd.f32 %v4330_v16, %v1101_v3  ;;  %v1095_v26 = vadd.f32 %v4331_v41, %v842_v1  ;;  %v1107_v52 = vadd.f32 %v4335_v33, %v862_v46  ;;  %v2737_v46 = vld [vmem:[%s3028_s7 + $0x78] sm:$0xff]  ;;  %v2738_v41 = vld [vmem:[%s3028_s7 + $0x70] sm:$0xff] }
 0x2c8   : > { %1938 = vst [vmem:[%s4051_s23 + $0x10] sm:$0xff] %v1922_v39  ;;  %v1925_v20 = vadd.f32 %v2727_v59, %v1857_v62  ;;  %v1851_v15 = vadd.f32 %v1850_v49, %v1674_v9  ;;  %v1692_v7 = vadd.f32 %v2529_v44, %v1467_v60  ;;  %v2591_v11 = vpop.f32.mrf.mxu1  ;;  %v2732_v62 = vld [vmem:[%s3028_s7 + $0x40] sm:$0xff]  ;;  %v4338_v59 = vld [vmem:[#allocation12_spill] sm:$0xff] }
 0x2c9   : > { %v1685_v30 = vpop.f32.mrf.mxu0  ;;  %v1515_v39 = vadd.f32 %v4336_v53, %v1308_v48 }
 0x2ca   : > { %1941 = vst [vmem:[%s4051_s23 + $0x28] sm:$0xff] %v1925_v20  ;;  %v1924_v45 = vadd.f32 %v2728_v35, %v1851_v15  ;;  %v1869_v49 = vadd.f32 %v2585_v32, %v1692_v7  ;;  %v1686_v37 = vadd.f32 %v1685_v30, %v1459_v0  ;;  %v1886_v5 = vpop.f32.mrf.mxu1  ;;  %v1315_v20 = vadd.f32 %v4338_v59, %v1107_v52  ;;  %v2733_v15 = vld [vmem:[%s3028_s7 + $0x58] sm:$0xff] }
 0x2cb   : > { %v2532_v8 = vpop.f32.mrf.mxu0 }
 0x2cc   : > { %1940 = vst [vmem:[%s4051_s23 + $0x20] sm:$0xff] %v1924_v45  ;;  %v1927_v13 = vadd.f32 %v2729_v42, %v1869_v49  ;;  %v1863_v56 = vadd.f32 %v1862_v12, %v1686_v37  ;;  %v1704_v32 = vadd.f32 %v2532_v8, %v1483_v47  ;;  %v1301_v12 = vadd.f32 %v4019_v57, %v1095_v26  ;;  %v2594_v36 = vpop.f32.mrf.mxu1  ;;  %v2735_v37 = vld [vmem:[%s3028_s7 + $0x68] sm:$0xff]  ;;  %v4340_v8 = vld [vmem:[#allocation35_spill] sm:$0xff] }
 0x2cd   : > { %v1697_v29 = vpop.f32.mrf.mxu0  ;;  %v1322_v57 = vadd.f32 %v4024_v21, %v1113_v54  ;;  %v2736_v42 = vld [vmem:[%s3028_s7 + $0x60] sm:$0xff] }
 0x2ce   : > { %1943 = vst [vmem:[%s4051_s23 + $0x38] sm:$0xff] %v1927_v13  ;;  %v1926_v61 = vadd.f32 %v2730_v38, %v1863_v56  ;;  %v1881_v63 = vadd.f32 %v2588_v14, %v1704_v32  ;;  %v1698_v2 = vadd.f32 %v1697_v29, %v1475_v51  ;;  %v1491_v14 = vadd.f32 %v4334_v22, %v1287_v31 }
 0x2cf   : > { %v2535_v40 = vpop.f32.mrf.mxu0  ;;  %v1507_v44 = vadd.f32 %v4337_v4, %v1301_v12  ;;  %v1531_v35 = vadd.f32 %v4339_v27, %v1322_v57  ;;  %v1523_v51 = vadd.f32 %v4340_v8, %v1315_v20 }
 0x2d0   : > { %1942 = vst [vmem:[%s4051_s23 + $0x30] sm:$0xff] %v1926_v61  ;;  %v1929_v28 = vadd.f32 %v2731_v17, %v1881_v63  ;;  %v1875_v10 = vadd.f32 %v1874_v19, %v1698_v2  ;;  %v1716_v23 = vadd.f32 %v2535_v40, %v1499_v6  ;;  %v1898_v19 = vpop.f32.mrf.mxu1 }
 0x2d1   : > { %v1709_v24 = vpop.f32.mrf.mxu0 }
 0x2d2   : > { %1945 = vst [vmem:[%s4051_s23 + $0x48] sm:$0xff] %v1929_v28  ;;  %v1928_v9 = vadd.f32 %v2732_v62, %v1875_v10  ;;  %v1893_v60 = vadd.f32 %v2591_v11, %v1716_v23  ;;  %v1710_v58 = vadd.f32 %v1709_v24, %v1491_v14  ;;  %v2597_v45 = vpop.f32.mrf.mxu1 }
 0x2d3   : > { %v2538_v34 = vpop.f32.mrf.mxu0 }
 0x2d4   : > { %1944 = vst [vmem:[%s4051_s23 + $0x40] sm:$0xff] %v1928_v9  ;;  %v1931_v7 = vadd.f32 %v2733_v15, %v1893_v60  ;;  %v1887_v0 = vadd.f32 %v1886_v5, %v1710_v58  ;;  %v1728_v21 = vadd.f32 %v2538_v34, %v1515_v39  ;;  %v1910_v55 = vpop.f32.mrf.mxu1 }
 0x2d5   : > { %v1721_v1 = vpop.f32.mrf.mxu0 }
 0x2d6   : > { %1947 = vst [vmem:[%s4051_s23 + $0x58] sm:$0xff] %v1931_v7  ;;  %v1930_v11 = vadd.f32 %v2734_v43, %v1887_v0  ;;  %v1905_v30 = vadd.f32 %v2594_v36, %v1728_v21  ;;  %v1722_v47 = vadd.f32 %v1721_v1, %v1507_v44 }
 0x2d7   : > { %v2541_v49 = vpop.f32.mrf.mxu0 }
 0x2d8   : > { %1946 = vst [vmem:[%s4051_s23 + $0x50] sm:$0xff] %v1930_v11  ;;  %v1933_v25 = vadd.f32 %v2735_v37, %v1905_v30  ;;  %v1899_v3 = vadd.f32 %v1898_v19, %v1722_v47  ;;  %v1740_v5 = vadd.f32 %v2541_v49, %v1531_v35 }
 0x2d9   : > { %v1733_v31 = vpop.f32.mrf.mxu0 }
 0x2da   : > { %1949 = vst [vmem:[%s4051_s23 + $0x68] sm:$0xff] %v1933_v25  ;;  %v1932_v13 = vadd.f32 %v2736_v42, %v1899_v3  ;;  %v1917_v56 = vadd.f32 %v2597_v45, %v1740_v5  ;;  %v1734_v32 = vadd.f32 %v1733_v31, %v1523_v51 }
 0x2dc   : > { %1948 = vst [vmem:[%s4051_s23 + $0x60] sm:$0xff] %v1932_v13  ;;  %v1935_v16 = vadd.f32 %v2737_v46, %v1917_v56  ;;  %v1911_v48 = vadd.f32 %v1910_v55, %v1734_v32 }
 0x2de   : > { %1951 = vst [vmem:[%s4051_s23 + $0x78] sm:$0xff] %v1935_v16  ;;  %v1934_v26 = vadd.f32 %v2738_v41, %v1911_v48 }
 0x2e0   : > { %1950 = vst [vmem:[%s4051_s23 + $0x70] sm:$0xff] %v1934_v26 }
 0x2e1   : > { %2806 = shalt.err (!%p2803_p0)
}
 0x2e2   : > { %s2807_s7 = scalar_lea.hbm %s4126_s11, 2048  ;;  %s2811_s6 = scalar_lea.hbm %s4179_s5, 4096 }
 0x2e3   : > { %p2808_p5 = scmp.ne.s32.totalorder %s4126_s11, %s2807_s7  ;;  %p2812_p4 = scmp.lt.s32.totalorder %s4126_s11, %s4179_s5 }
 0x2e4   : > { %p2813_p6 = scmp.lt.s32.totalorder %s2811_s6, %s2807_s7 }
 0x2e5   : > { %p2809_p2 = pnand %p2808_p5, %p4341_p11 }
 0x2e6   : > { %p2814_p8 = por %p2813_p6, %p2812_p4 }
 0x2e7   : > { %p2810_p1 = pneg %p2809_p2 }
 0x2e9   : > { %p2815_p3 = pnand %p2814_p8, %p2810_p1 }
 0x2eb   : > { %2818 = shalt.err (!%p2815_p3)
}
 0x2ec   : > { %s2868_s27 = smov 128   ;;  %s2869_s28 = smov 8  }
 0x2ed   : > { %2604 = dma.vmem_to_hbm [thread:$0]  (%p4341_p11), %s4128_s15, 2048, %s4126_s11, %s1953_s22, %s2868_s27, %s2868_s27, %s2869_s28  }
 0x2ee PF: > { %s1981_s12 = sand.u32 1, %s2849_s18   ;;  %p4342_p7 = scmp.ne.s32.totalorder %s4246_s25, 0 }
 0x2ef   : > { %p4343_p9 = scmp.ge.s32.totalorder %s2861_s21, 2  ;;  %s1982_s9 = scalar_lea.sflag [#allocation4], %s1981_s12 }
 0x2f1   : > { %p2615_p10 = pnand %p4343_p9, %p4342_p7 }
 0x2f3   : > { %p2616_p12 = pneg %p2615_p10 }
 0x2f5   : > { %2844 = dma.done.wait (%p2616_p12), %s1982_s9, 2048  }
 0x2f6   : > { %2846 = vsyncadd (%p2616_p12), %s1982_s9, 4294965248  ;;  %p19_p13 = scmp.ge.s32.totalorder %s2954_s30, 4   ;;  %s4344_s18 = smov %s2853_s19 }
 0x2f7   : > { %s4345_s19 = smov %s2857_s20  ;;  %s4346_s20 = smov %s2974_s13 }
 0x2f8   : > { %s4347_s21 = smov %s2954_s30  ;;  %21 = sbr.rel (!%p19_p13) target bundleno = 6 (0x6), region = 89 }
 0x2fd   :  { %1987 = vsyncpa [#allocation3], 1 }
 0x2fe   :  { %1989 = vsyncpa [#allocation3 + $0x1], 1 }
 0x2ff   :  { %1990 = vsyncpa [#allocation6], 1 }
 0x300   :  { %1991 = vsyncpa [#allocation4], 1 }
 0x301   :  { %1993 = vsyncpa [#allocation4 + $0x1], 1 }

</bundles_post_ra>
